<compile_context>
chip_gen: v5e
topology: v5e:2x2
jax: 0.10.0
libtpu: 0.0.40
codegen_flags: <defaults>
</compile_context>

<pallas_src>
import jax
import jax.numpy as jnp
from jax.experimental import pallas as pl
from jax.experimental.pallas import tpu as pltpu


# ----------------------------------------------------------------------------
# Fused Pallas kernel: n_layers x LSTM  +  flatten  +  FC
# ----------------------------------------------------------------------------
def _make_fused_lstm_fc_kernel(T, Bp, D, H, C, n_layers):
    """Build a kernel computing the full model in a single invocation.

    Kernel ref layout (all resident in VMEM):
      refs[0]                 : x        (T*Bp, D)   time-major rows = t*Bp + b
      refs[1 + 3*l + 0]       : w_ih_l   (D_in, 4H)
      refs[1 + 3*l + 1]       : w_hh_l   (H, 4H)
      refs[1 + 3*l + 2]       : b_l      (1, 4H)     (b_ih + b_hh)
      refs[1 + 3*n_layers]    : w_fc     (T*H, C)    == fc.weight.T
      refs[2 + 3*n_layers]    : b_fc     (1, C)
      refs[3 + 3*n_layers]    : out      (Bp, C)
    """

    def kernel(*refs):
        x_ref = refs[0]
        layer_refs = refs[1:1 + 3 * n_layers]
        w_fc_ref = refs[1 + 3 * n_layers]
        b_fc_ref = refs[2 + 3 * n_layers]
        out_ref = refs[3 + 3 * n_layers]

        # Time-major flat activations feeding the current layer: (T*Bp, D_in).
        prev_flat = x_ref[...]
        hs = None
        for layer in range(n_layers):
            w_ih = layer_refs[3 * layer + 0][...]
            w_hh = layer_refs[3 * layer + 1][...]
            b = layer_refs[3 * layer + 2][...]

            # ---- stacked input projection for ALL timesteps, bias folded in ----
            # One MXU matmul per layer; entirely off the h->h critical path.
            xp_full = (
                jnp.dot(prev_flat, w_ih, preferred_element_type=jnp.float32) + b
            )  # (T*Bp, 4H)

            # ---- recurrence (fully unrolled; per step: one small matmul) ----
            h = jnp.zeros((Bp, H), jnp.float32)   # h0 = 0
            c = jnp.zeros((Bp, H), jnp.float32)   # c0 = 0
            hs = []
            for t in range(T):
                # Bp % 8 == 0  ->  sublane-aligned slice, no relayout copies.
                xp_t = xp_full[t * Bp:(t + 1) * Bp, :]
                gates = xp_t + jnp.dot(
                    h, w_hh, preferred_element_type=jnp.float32
                )                                 # (Bp, 4H), PyTorch order i,f,g,o
                sg = jax.nn.sigmoid(gates)        # lane-dense EUP op
                tg = jnp.tanh(gates)              # lane-dense EUP op
                i_g = sg[:, 0 * H:1 * H]
                f_g = sg[:, 1 * H:2 * H]
                g_g = tg[:, 2 * H:3 * H]
                o_g = sg[:, 3 * H:4 * H]
                c = f_g * c + i_g * g_g
                h = o_g * jnp.tanh(c)
                hs.append(h)

            # Feed next layer as one time-major flat block (cheap sublane concat).
            prev_flat = jnp.concatenate(hs, axis=0)     # (T*Bp, H)

        # ---- FC fused in: equals reshape(out_seq, (B, T*H)) @ W_fc + b_fc ----
        # Lane-concat gives exactly the PyTorch feature order (index = t*H + h);
        # single MXU contraction + one bias add.
        flat = jnp.concatenate(hs, axis=1)              # (Bp, T*H)
        out = (
            jnp.dot(flat, w_fc_ref[...], preferred_element_type=jnp.float32)
            + b_fc_ref[...]
        )
        out_ref[...] = out.astype(out_ref.dtype)

    return kernel


def _full_block(shape):
    """BlockSpec mapping the whole array into VMEM (grid=(1,))."""
    nd = len(shape)
    return pl.BlockSpec(shape, lambda i, _nd=nd: (0,) * _nd)


# ----------------------------------------------------------------------------
# Model: parameter init + forward
# ----------------------------------------------------------------------------
def init_params(key, seq_length, input_size, hidden_size, n_layers, n_classes):
    params = {"lstm": [], "fc": None}
    k = 1.0 / jnp.sqrt(jnp.float32(hidden_size))
    for layer in range(n_layers):
        d_in = input_size if layer == 0 else hidden_size
        key, k1, k2, k3, k4 = jax.random.split(key, 5)
        w_ih = jax.random.uniform(k1, (d_in, 4 * hidden_size), jnp.float32, -k, k)
        w_hh = jax.random.uniform(k2, (hidden_size, 4 * hidden_size), jnp.float32, -k, k)
        b_ih = jax.random.uniform(k3, (4 * hidden_size,), jnp.float32, -k, k)
        b_hh = jax.random.uniform(k4, (4 * hidden_size,), jnp.float32, -k, k)
        params["lstm"].append(
            {"w_ih": w_ih, "w_hh": w_hh, "b": (b_ih + b_hh).reshape(1, -1)}
        )
    fan_in = hidden_size * seq_length
    kf = 1.0 / jnp.sqrt(jnp.float32(fan_in))
    key, k1, k2 = jax.random.split(key, 3)
    w_fc = jax.random.uniform(k1, (fan_in, n_classes), jnp.float32, -kf, kf)
    b_fc = jax.random.uniform(k2, (1, n_classes), jnp.float32, -kf, kf)
    params["fc"] = {"w": w_fc, "b": b_fc}
    return params


@jax.jit
def lstm_forward(x, params):
    """x: (B, T, input_size) batch-first, like the PyTorch module."""
    B, T, D = x.shape
    H = params["lstm"][0]["w_hh"].shape[0]
    C = params["fc"]["w"].shape[1]
    n_layers = len(params["lstm"])

    # Pad the batch to a sublane multiple so every per-t slice inside the kernel
    # is 8-row aligned (extra MXU rows are free; pad rows are dropped at the end).
    Bp = max(8, -(-B // 8) * 8)
    x_pad = jnp.pad(x, ((0, Bp - B), (0, 0), (0, 0)))

    # Time-major, flattened to (T*Bp, D) so the layer-0 input projection is one
    # MXU matmul over all timesteps (tiny XLA transpose, fused into the jit).
    x2d = jnp.transpose(x_pad, (1, 0, 2)).reshape(T * Bp, D)

    args = [x2d]
    specs = [_full_block(x2d.shape)]
    for p in params["lstm"]:
        args += [p["w_ih"], p["w_hh"], p["b"]]
        specs += [
            _full_block(p["w_ih"].shape),
            _full_block(p["w_hh"].shape),
            _full_block(p["b"].shape),
        ]
    args += [params["fc"]["w"], params["fc"]["b"]]
    specs += [_full_block(params["fc"]["w"].shape),
              _full_block(params["fc"]["b"].shape)]

    kernel = _make_fused_lstm_fc_kernel(T, Bp, D, H, C, n_layers)
    out_pad = pl.pallas_call(
        kernel,
        out_shape=jax.ShapeDtypeStruct((Bp, C), x.dtype),
        grid=(1,),
        in_specs=specs,
        out_specs=_full_block((Bp, C)),
        compiler_params=pltpu.CompilerParams(
            dimension_semantics=("arbitrary",)
        ),
    )(*args)
    return out_pad[:B]


# ----------------------------------------------------------------------------
# Main
# ----------------------------------------------------------------------------
if __name__ == "__main__":
    SEQ_LENGTH = 8
    INPUT_SIZE = 16
    HIDDEN_SIZE = 32
    N_LAYERS = 2
    N_CLASSES = 4
    BATCH = 2

    key = jax.random.PRNGKey(0)
    key, pkey, xkey = jax.random.split(key, 3)

    params = init_params(pkey, SEQ_LENGTH, INPUT_SIZE, HIDDEN_SIZE, N_LAYERS, N_CLASSES)
    x = jax.random.normal(xkey, (BATCH, SEQ_LENGTH, INPUT_SIZE), dtype=jnp.float32)

    logits = lstm_forward(x, params)
    jax.block_until_ready(logits)

    assert logits.shape == (BATCH, N_CLASSES), logits.shape
    assert logits.dtype == jnp.float32
    print("KERNEL_OK")
</pallas_src>

<mosaic_0001>
module attributes {stable_mosaic.version = 11 : i64} {
  func.func @kernel(%arg0: i32, %arg1: memref<64x16xf32, #tpu.memory_space<vmem>>, %arg2: memref<16x128xf32, #tpu.memory_space<vmem>>, %arg3: memref<32x128xf32, #tpu.memory_space<vmem>>, %arg4: memref<1x128xf32, #tpu.memory_space<vmem>>, %arg5: memref<32x128xf32, #tpu.memory_space<vmem>>, %arg6: memref<32x128xf32, #tpu.memory_space<vmem>>, %arg7: memref<1x128xf32, #tpu.memory_space<vmem>>, %arg8: memref<256x4xf32, #tpu.memory_space<vmem>>, %arg9: memref<1x4xf32, #tpu.memory_space<vmem>>, %arg10: memref<8x4xf32, #tpu.memory_space<vmem>>) attributes {dimension_semantics = [#tpu.dimension_semantics<arbitrary>], iteration_bounds = array<i64: 1>, scalar_prefetch = 0 : i64, scratch_operands = 0 : i64, tpu.core_type = #tpu.core_type<tc>, window_params = [{pipeline_mode = #tpu.pipeline_mode<synchronous>, transform_indices = @transform_0, window_bounds = array<i64: 64, 16>}, {pipeline_mode = #tpu.pipeline_mode<synchronous>, transform_indices = @transform_1, window_bounds = array<i64: 16, 128>}, {pipeline_mode = #tpu.pipeline_mode<synchronous>, transform_indices = @transform_2, window_bounds = array<i64: 32, 128>}, {pipeline_mode = #tpu.pipeline_mode<synchronous>, transform_indices = @transform_3, window_bounds = array<i64: 1, 128>}, {pipeline_mode = #tpu.pipeline_mode<synchronous>, transform_indices = @transform_4, window_bounds = array<i64: 32, 128>}, {pipeline_mode = #tpu.pipeline_mode<synchronous>, transform_indices = @transform_5, window_bounds = array<i64: 32, 128>}, {pipeline_mode = #tpu.pipeline_mode<synchronous>, transform_indices = @transform_6, window_bounds = array<i64: 1, 128>}, {pipeline_mode = #tpu.pipeline_mode<synchronous>, transform_indices = @transform_7, window_bounds = array<i64: 256, 4>}, {pipeline_mode = #tpu.pipeline_mode<synchronous>, transform_indices = @transform_8, window_bounds = array<i64: 1, 4>}, {pipeline_mode = #tpu.pipeline_mode<synchronous>, transform_indices = @transform_9, window_bounds = array<i64: 8, 4>}]} {
    %c0 = arith.constant 0 : index
    %c0_0 = arith.constant 0 : index
    %0 = vector.load %arg1[%c0, %c0_0] : memref<64x16xf32, #tpu.memory_space<vmem>>, vector<64x16xf32>
    %c0_1 = arith.constant 0 : index
    %c0_2 = arith.constant 0 : index
    %1 = vector.load %arg2[%c0_1, %c0_2] : memref<16x128xf32, #tpu.memory_space<vmem>>, vector<16x128xf32>
    %c0_3 = arith.constant 0 : index
    %c0_4 = arith.constant 0 : index
    %2 = vector.load %arg3[%c0_3, %c0_4] : memref<32x128xf32, #tpu.memory_space<vmem>>, vector<32x128xf32>
    %c0_5 = arith.constant 0 : index
    %c0_6 = arith.constant 0 : index
    %3 = vector.load %arg4[%c0_5, %c0_6] : memref<1x128xf32, #tpu.memory_space<vmem>>, vector<1x128xf32>
    %cst = arith.constant dense<0.000000e+00> : vector<64x128xf32>
    %4 = tpu.matmul %0, %1, %cst {dimension_numbers = #tpu.dot_dimension_numbers<[1], [0], [0], [1], [0, 0, 1, 1], [], []>} : vector<64x16xf32>, vector<16x128xf32>, vector<64x128xf32> -> vector<64x128xf32>
    %5 = vector.broadcast %3 : vector<1x128xf32> to vector<64x128xf32>
    %6 = arith.addf %4, %5 : vector<64x128xf32>
    %cst_7 = arith.constant 0.000000e+00 : f32
    %7 = vector.broadcast %cst_7 : f32 to vector<8x32xf32>
    %cst_8 = arith.constant 0.000000e+00 : f32
    %8 = vector.broadcast %cst_8 : f32 to vector<8x32xf32>
    %9 = vector.extract_strided_slice %6 {offsets = [0, 0], sizes = [8, 128], strides = [1, 1]} : vector<64x128xf32> to vector<8x128xf32>
    %cst_9 = arith.constant dense<0.000000e+00> : vector<8x128xf32>
    %10 = tpu.matmul %7, %2, %cst_9 {dimension_numbers = #tpu.dot_dimension_numbers<[1], [0], [0], [1], [0, 0, 1, 1], [], []>} : vector<8x32xf32>, vector<32x128xf32>, vector<8x128xf32> -> vector<8x128xf32>
    %11 = arith.addf %9, %10 : vector<8x128xf32>
    %12 = arith.negf %11 : vector<8x128xf32>
    %13 = math.exp %12 : vector<8x128xf32>
    %cst_10 = arith.constant 1.000000e+00 : f32
    %14 = vector.broadcast %cst_10 : f32 to vector<8x128xf32>
    %15 = arith.addf %14, %13 : vector<8x128xf32>
    %16 = arith.divf %14, %15 : vector<8x128xf32>
    %17 = math.tanh %11 : vector<8x128xf32>
    %18 = vector.extract_strided_slice %16 {offsets = [0, 0], sizes = [8, 32], strides = [1, 1]} : vector<8x128xf32> to vector<8x32xf32>
    %19 = vector.extract_strided_slice %16 {offsets = [0, 32], sizes = [8, 32], strides = [1, 1]} : vector<8x128xf32> to vector<8x32xf32>
    %20 = vector.extract_strided_slice %17 {offsets = [0, 64], sizes = [8, 32], strides = [1, 1]} : vector<8x128xf32> to vector<8x32xf32>
    %21 = vector.extract_strided_slice %16 {offsets = [0, 96], sizes = [8, 32], strides = [1, 1]} : vector<8x128xf32> to vector<8x32xf32>
    %22 = arith.mulf %19, %8 : vector<8x32xf32>
    %23 = arith.mulf %18, %20 : vector<8x32xf32>
    %24 = arith.addf %22, %23 : vector<8x32xf32>
    %25 = math.tanh %24 : vector<8x32xf32>
    %26 = arith.mulf %21, %25 : vector<8x32xf32>
    %27 = vector.extract_strided_slice %6 {offsets = [8, 0], sizes = [8, 128], strides = [1, 1]} : vector<64x128xf32> to vector<8x128xf32>
    %cst_11 = arith.constant dense<0.000000e+00> : vector<8x128xf32>
    %28 = tpu.matmul %26, %2, %cst_11 {dimension_numbers = #tpu.dot_dimension_numbers<[1], [0], [0], [1], [0, 0, 1, 1], [], []>} : vector<8x32xf32>, vector<32x128xf32>, vector<8x128xf32> -> vector<8x128xf32>
    %29 = arith.addf %27, %28 : vector<8x128xf32>
    %30 = arith.negf %29 : vector<8x128xf32>
    %31 = math.exp %30 : vector<8x128xf32>
    %cst_12 = arith.constant 1.000000e+00 : f32
    %32 = vector.broadcast %cst_12 : f32 to vector<8x128xf32>
    %33 = arith.addf %32, %31 : vector<8x128xf32>
    %34 = arith.divf %32, %33 : vector<8x128xf32>
    %35 = math.tanh %29 : vector<8x128xf32>
    %36 = vector.extract_strided_slice %34 {offsets = [0, 0], sizes = [8, 32], strides = [1, 1]} : vector<8x128xf32> to vector<8x32xf32>
    %37 = vector.extract_strided_slice %34 {offsets = [0, 32], sizes = [8, 32], strides = [1, 1]} : vector<8x128xf32> to vector<8x32xf32>
    %38 = vector.extract_strided_slice %35 {offsets = [0, 64], sizes = [8, 32], strides = [1, 1]} : vector<8x128xf32> to vector<8x32xf32>
    %39 = vector.extract_strided_slice %34 {offsets = [0, 96], sizes = [8, 32], strides = [1, 1]} : vector<8x128xf32> to vector<8x32xf32>
    %40 = arith.mulf %37, %24 : vector<8x32xf32>
    %41 = arith.mulf %36, %38 : vector<8x32xf32>
    %42 = arith.addf %40, %41 : vector<8x32xf32>
    %43 = math.tanh %42 : vector<8x32xf32>
    %44 = arith.mulf %39, %43 : vector<8x32xf32>
    %45 = vector.extract_strided_slice %6 {offsets = [16, 0], sizes = [8, 128], strides = [1, 1]} : vector<64x128xf32> to vector<8x128xf32>
    %cst_13 = arith.constant dense<0.000000e+00> : vector<8x128xf32>
    %46 = tpu.matmul %44, %2, %cst_13 {dimension_numbers = #tpu.dot_dimension_numbers<[1], [0], [0], [1], [0, 0, 1, 1], [], []>} : vector<8x32xf32>, vector<32x128xf32>, vector<8x128xf32> -> vector<8x128xf32>
    %47 = arith.addf %45, %46 : vector<8x128xf32>
    %48 = arith.negf %47 : vector<8x128xf32>
    %49 = math.exp %48 : vector<8x128xf32>
    %cst_14 = arith.constant 1.000000e+00 : f32
    %50 = vector.broadcast %cst_14 : f32 to vector<8x128xf32>
    %51 = arith.addf %50, %49 : vector<8x128xf32>
    %52 = arith.divf %50, %51 : vector<8x128xf32>
    %53 = math.tanh %47 : vector<8x128xf32>
    %54 = vector.extract_strided_slice %52 {offsets = [0, 0], sizes = [8, 32], strides = [1, 1]} : vector<8x128xf32> to vector<8x32xf32>
    %55 = vector.extract_strided_slice %52 {offsets = [0, 32], sizes = [8, 32], strides = [1, 1]} : vector<8x128xf32> to vector<8x32xf32>
    %56 = vector.extract_strided_slice %53 {offsets = [0, 64], sizes = [8, 32], strides = [1, 1]} : vector<8x128xf32> to vector<8x32xf32>
    %57 = vector.extract_strided_slice %52 {offsets = [0, 96], sizes = [8, 32], strides = [1, 1]} : vector<8x128xf32> to vector<8x32xf32>
    %58 = arith.mulf %55, %42 : vector<8x32xf32>
    %59 = arith.mulf %54, %56 : vector<8x32xf32>
    %60 = arith.addf %58, %59 : vector<8x32xf32>
    %61 = math.tanh %60 : vector<8x32xf32>
    %62 = arith.mulf %57, %61 : vector<8x32xf32>
    %63 = vector.extract_strided_slice %6 {offsets = [24, 0], sizes = [8, 128], strides = [1, 1]} : vector<64x128xf32> to vector<8x128xf32>
    %cst_15 = arith.constant dense<0.000000e+00> : vector<8x128xf32>
    %64 = tpu.matmul %62, %2, %cst_15 {dimension_numbers = #tpu.dot_dimension_numbers<[1], [0], [0], [1], [0, 0, 1, 1], [], []>} : vector<8x32xf32>, vector<32x128xf32>, vector<8x128xf32> -> vector<8x128xf32>
    %65 = arith.addf %63, %64 : vector<8x128xf32>
    %66 = arith.negf %65 : vector<8x128xf32>
    %67 = math.exp %66 : vector<8x128xf32>
    %cst_16 = arith.constant 1.000000e+00 : f32
    %68 = vector.broadcast %cst_16 : f32 to vector<8x128xf32>
    %69 = arith.addf %68, %67 : vector<8x128xf32>
    %70 = arith.divf %68, %69 : vector<8x128xf32>
    %71 = math.tanh %65 : vector<8x128xf32>
    %72 = vector.extract_strided_slice %70 {offsets = [0, 0], sizes = [8, 32], strides = [1, 1]} : vector<8x128xf32> to vector<8x32xf32>
    %73 = vector.extract_strided_slice %70 {offsets = [0, 32], sizes = [8, 32], strides = [1, 1]} : vector<8x128xf32> to vector<8x32xf32>
    %74 = vector.extract_strided_slice %71 {offsets = [0, 64], sizes = [8, 32], strides = [1, 1]} : vector<8x128xf32> to vector<8x32xf32>
    %75 = vector.extract_strided_slice %70 {offsets = [0, 96], sizes = [8, 32], strides = [1, 1]} : vector<8x128xf32> to vector<8x32xf32>
    %76 = arith.mulf %73, %60 : vector<8x32xf32>
    %77 = arith.mulf %72, %74 : vector<8x32xf32>
    %78 = arith.addf %76, %77 : vector<8x32xf32>
    %79 = math.tanh %78 : vector<8x32xf32>
    %80 = arith.mulf %75, %79 : vector<8x32xf32>
    %81 = vector.extract_strided_slice %6 {offsets = [32, 0], sizes = [8, 128], strides = [1, 1]} : vector<64x128xf32> to vector<8x128xf32>
    %cst_17 = arith.constant dense<0.000000e+00> : vector<8x128xf32>
    %82 = tpu.matmul %80, %2, %cst_17 {dimension_numbers = #tpu.dot_dimension_numbers<[1], [0], [0], [1], [0, 0, 1, 1], [], []>} : vector<8x32xf32>, vector<32x128xf32>, vector<8x128xf32> -> vector<8x128xf32>
    %83 = arith.addf %81, %82 : vector<8x128xf32>
    %84 = arith.negf %83 : vector<8x128xf32>
    %85 = math.exp %84 : vector<8x128xf32>
    %cst_18 = arith.constant 1.000000e+00 : f32
    %86 = vector.broadcast %cst_18 : f32 to vector<8x128xf32>
    %87 = arith.addf %86, %85 : vector<8x128xf32>
    %88 = arith.divf %86, %87 : vector<8x128xf32>
    %89 = math.tanh %83 : vector<8x128xf32>
    %90 = vector.extract_strided_slice %88 {offsets = [0, 0], sizes = [8, 32], strides = [1, 1]} : vector<8x128xf32> to vector<8x32xf32>
    %91 = vector.extract_strided_slice %88 {offsets = [0, 32], sizes = [8, 32], strides = [1, 1]} : vector<8x128xf32> to vector<8x32xf32>
    %92 = vector.extract_strided_slice %89 {offsets = [0, 64], sizes = [8, 32], strides = [1, 1]} : vector<8x128xf32> to vector<8x32xf32>
    %93 = vector.extract_strided_slice %88 {offsets = [0, 96], sizes = [8, 32], strides = [1, 1]} : vector<8x128xf32> to vector<8x32xf32>
    %94 = arith.mulf %91, %78 : vector<8x32xf32>
    %95 = arith.mulf %90, %92 : vector<8x32xf32>
    %96 = arith.addf %94, %95 : vector<8x32xf32>
    %97 = math.tanh %96 : vector<8x32xf32>
    %98 = arith.mulf %93, %97 : vector<8x32xf32>
    %99 = vector.extract_strided_slice %6 {offsets = [40, 0], sizes = [8, 128], strides = [1, 1]} : vector<64x128xf32> to vector<8x128xf32>
    %cst_19 = arith.constant dense<0.000000e+00> : vector<8x128xf32>
    %100 = tpu.matmul %98, %2, %cst_19 {dimension_numbers = #tpu.dot_dimension_numbers<[1], [0], [0], [1], [0, 0, 1, 1], [], []>} : vector<8x32xf32>, vector<32x128xf32>, vector<8x128xf32> -> vector<8x128xf32>
    %101 = arith.addf %99, %100 : vector<8x128xf32>
    %102 = arith.negf %101 : vector<8x128xf32>
    %103 = math.exp %102 : vector<8x128xf32>
    %cst_20 = arith.constant 1.000000e+00 : f32
    %104 = vector.broadcast %cst_20 : f32 to vector<8x128xf32>
    %105 = arith.addf %104, %103 : vector<8x128xf32>
    %106 = arith.divf %104, %105 : vector<8x128xf32>
    %107 = math.tanh %101 : vector<8x128xf32>
    %108 = vector.extract_strided_slice %106 {offsets = [0, 0], sizes = [8, 32], strides = [1, 1]} : vector<8x128xf32> to vector<8x32xf32>
    %109 = vector.extract_strided_slice %106 {offsets = [0, 32], sizes = [8, 32], strides = [1, 1]} : vector<8x128xf32> to vector<8x32xf32>
    %110 = vector.extract_strided_slice %107 {offsets = [0, 64], sizes = [8, 32], strides = [1, 1]} : vector<8x128xf32> to vector<8x32xf32>
    %111 = vector.extract_strided_slice %106 {offsets = [0, 96], sizes = [8, 32], strides = [1, 1]} : vector<8x128xf32> to vector<8x32xf32>
    %112 = arith.mulf %109, %96 : vector<8x32xf32>
    %113 = arith.mulf %108, %110 : vector<8x32xf32>
    %114 = arith.addf %112, %113 : vector<8x32xf32>
    %115 = math.tanh %114 : vector<8x32xf32>
    %116 = arith.mulf %111, %115 : vector<8x32xf32>
    %117 = vector.extract_strided_slice %6 {offsets = [48, 0], sizes = [8, 128], strides = [1, 1]} : vector<64x128xf32> to vector<8x128xf32>
    %cst_21 = arith.constant dense<0.000000e+00> : vector<8x128xf32>
    %118 = tpu.matmul %116, %2, %cst_21 {dimension_numbers = #tpu.dot_dimension_numbers<[1], [0], [0], [1], [0, 0, 1, 1], [], []>} : vector<8x32xf32>, vector<32x128xf32>, vector<8x128xf32> -> vector<8x128xf32>
    %119 = arith.addf %117, %118 : vector<8x128xf32>
    %120 = arith.negf %119 : vector<8x128xf32>
    %121 = math.exp %120 : vector<8x128xf32>
    %cst_22 = arith.constant 1.000000e+00 : f32
    %122 = vector.broadcast %cst_22 : f32 to vector<8x128xf32>
    %123 = arith.addf %122, %121 : vector<8x128xf32>
    %124 = arith.divf %122, %123 : vector<8x128xf32>
    %125 = math.tanh %119 : vector<8x128xf32>
    %126 = vector.extract_strided_slice %124 {offsets = [0, 0], sizes = [8, 32], strides = [1, 1]} : vector<8x128xf32> to vector<8x32xf32>
    %127 = vector.extract_strided_slice %124 {offsets = [0, 32], sizes = [8, 32], strides = [1, 1]} : vector<8x128xf32> to vector<8x32xf32>
    %128 = vector.extract_strided_slice %125 {offsets = [0, 64], sizes = [8, 32], strides = [1, 1]} : vector<8x128xf32> to vector<8x32xf32>
    %129 = vector.extract_strided_slice %124 {offsets = [0, 96], sizes = [8, 32], strides = [1, 1]} : vector<8x128xf32> to vector<8x32xf32>
    %130 = arith.mulf %127, %114 : vector<8x32xf32>
    %131 = arith.mulf %126, %128 : vector<8x32xf32>
    %132 = arith.addf %130, %131 : vector<8x32xf32>
    %133 = math.tanh %132 : vector<8x32xf32>
    %134 = arith.mulf %129, %133 : vector<8x32xf32>
    %135 = vector.extract_strided_slice %6 {offsets = [56, 0], sizes = [8, 128], strides = [1, 1]} : vector<64x128xf32> to vector<8x128xf32>
    %cst_23 = arith.constant dense<0.000000e+00> : vector<8x128xf32>
    %136 = tpu.matmul %134, %2, %cst_23 {dimension_numbers = #tpu.dot_dimension_numbers<[1], [0], [0], [1], [0, 0, 1, 1], [], []>} : vector<8x32xf32>, vector<32x128xf32>, vector<8x128xf32> -> vector<8x128xf32>
    %137 = arith.addf %135, %136 : vector<8x128xf32>
    %138 = arith.negf %137 : vector<8x128xf32>
    %139 = math.exp %138 : vector<8x128xf32>
    %cst_24 = arith.constant 1.000000e+00 : f32
    %140 = vector.broadcast %cst_24 : f32 to vector<8x128xf32>
    %141 = arith.addf %140, %139 : vector<8x128xf32>
    %142 = arith.divf %140, %141 : vector<8x128xf32>
    %143 = math.tanh %137 : vector<8x128xf32>
    %144 = vector.extract_strided_slice %142 {offsets = [0, 0], sizes = [8, 32], strides = [1, 1]} : vector<8x128xf32> to vector<8x32xf32>
    %145 = vector.extract_strided_slice %142 {offsets = [0, 32], sizes = [8, 32], strides = [1, 1]} : vector<8x128xf32> to vector<8x32xf32>
    %146 = vector.extract_strided_slice %143 {offsets = [0, 64], sizes = [8, 32], strides = [1, 1]} : vector<8x128xf32> to vector<8x32xf32>
    %147 = vector.extract_strided_slice %142 {offsets = [0, 96], sizes = [8, 32], strides = [1, 1]} : vector<8x128xf32> to vector<8x32xf32>
    %148 = arith.mulf %145, %132 : vector<8x32xf32>
    %149 = arith.mulf %144, %146 : vector<8x32xf32>
    %150 = arith.addf %148, %149 : vector<8x32xf32>
    %151 = math.tanh %150 : vector<8x32xf32>
    %152 = arith.mulf %147, %151 : vector<8x32xf32>
    %153 = tpu.concatenate %26, %44, %62, %80, %98, %116, %134, %152 in 0 : vector<8x32xf32>, vector<8x32xf32>, vector<8x32xf32>, vector<8x32xf32>, vector<8x32xf32>, vector<8x32xf32>, vector<8x32xf32>, vector<8x32xf32> -> vector<64x32xf32>
    %c0_25 = arith.constant 0 : index
    %c0_26 = arith.constant 0 : index
    %154 = vector.load %arg5[%c0_25, %c0_26] : memref<32x128xf32, #tpu.memory_space<vmem>>, vector<32x128xf32>
    %c0_27 = arith.constant 0 : index
    %c0_28 = arith.constant 0 : index
    %155 = vector.load %arg6[%c0_27, %c0_28] : memref<32x128xf32, #tpu.memory_space<vmem>>, vector<32x128xf32>
    %c0_29 = arith.constant 0 : index
    %c0_30 = arith.constant 0 : index
    %156 = vector.load %arg7[%c0_29, %c0_30] : memref<1x128xf32, #tpu.memory_space<vmem>>, vector<1x128xf32>
    %cst_31 = arith.constant dense<0.000000e+00> : vector<64x128xf32>
    %157 = tpu.matmul %153, %154, %cst_31 {dimension_numbers = #tpu.dot_dimension_numbers<[1], [0], [0], [1], [0, 0, 1, 1], [], []>} : vector<64x32xf32>, vector<32x128xf32>, vector<64x128xf32> -> vector<64x128xf32>
    %158 = vector.broadcast %156 : vector<1x128xf32> to vector<64x128xf32>
    %159 = arith.addf %157, %158 : vector<64x128xf32>
    %cst_32 = arith.constant 0.000000e+00 : f32
    %160 = vector.broadcast %cst_32 : f32 to vector<8x32xf32>
    %cst_33 = arith.constant 0.000000e+00 : f32
    %161 = vector.broadcast %cst_33 : f32 to vector<8x32xf32>
    %162 = vector.extract_strided_slice %159 {offsets = [0, 0], sizes = [8, 128], strides = [1, 1]} : vector<64x128xf32> to vector<8x128xf32>
    %cst_34 = arith.constant dense<0.000000e+00> : vector<8x128xf32>
    %163 = tpu.matmul %160, %155, %cst_34 {dimension_numbers = #tpu.dot_dimension_numbers<[1], [0], [0], [1], [0, 0, 1, 1], [], []>} : vector<8x32xf32>, vector<32x128xf32>, vector<8x128xf32> -> vector<8x128xf32>
    %164 = arith.addf %162, %163 : vector<8x128xf32>
    %165 = arith.negf %164 : vector<8x128xf32>
    %166 = math.exp %165 : vector<8x128xf32>
    %cst_35 = arith.constant 1.000000e+00 : f32
    %167 = vector.broadcast %cst_35 : f32 to vector<8x128xf32>
    %168 = arith.addf %167, %166 : vector<8x128xf32>
    %169 = arith.divf %167, %168 : vector<8x128xf32>
    %170 = math.tanh %164 : vector<8x128xf32>
    %171 = vector.extract_strided_slice %169 {offsets = [0, 0], sizes = [8, 32], strides = [1, 1]} : vector<8x128xf32> to vector<8x32xf32>
    %172 = vector.extract_strided_slice %169 {offsets = [0, 32], sizes = [8, 32], strides = [1, 1]} : vector<8x128xf32> to vector<8x32xf32>
    %173 = vector.extract_strided_slice %170 {offsets = [0, 64], sizes = [8, 32], strides = [1, 1]} : vector<8x128xf32> to vector<8x32xf32>
    %174 = vector.extract_strided_slice %169 {offsets = [0, 96], sizes = [8, 32], strides = [1, 1]} : vector<8x128xf32> to vector<8x32xf32>
    %175 = arith.mulf %172, %161 : vector<8x32xf32>
    %176 = arith.mulf %171, %173 : vector<8x32xf32>
    %177 = arith.addf %175, %176 : vector<8x32xf32>
    %178 = math.tanh %177 : vector<8x32xf32>
    %179 = arith.mulf %174, %178 : vector<8x32xf32>
    %180 = vector.extract_strided_slice %159 {offsets = [8, 0], sizes = [8, 128], strides = [1, 1]} : vector<64x128xf32> to vector<8x128xf32>
    %cst_36 = arith.constant dense<0.000000e+00> : vector<8x128xf32>
    %181 = tpu.matmul %179, %155, %cst_36 {dimension_numbers = #tpu.dot_dimension_numbers<[1], [0], [0], [1], [0, 0, 1, 1], [], []>} : vector<8x32xf32>, vector<32x128xf32>, vector<8x128xf32> -> vector<8x128xf32>
    %182 = arith.addf %180, %181 : vector<8x128xf32>
    %183 = arith.negf %182 : vector<8x128xf32>
    %184 = math.exp %183 : vector<8x128xf32>
    %cst_37 = arith.constant 1.000000e+00 : f32
    %185 = vector.broadcast %cst_37 : f32 to vector<8x128xf32>
    %186 = arith.addf %185, %184 : vector<8x128xf32>
    %187 = arith.divf %185, %186 : vector<8x128xf32>
    %188 = math.tanh %182 : vector<8x128xf32>
    %189 = vector.extract_strided_slice %187 {offsets = [0, 0], sizes = [8, 32], strides = [1, 1]} : vector<8x128xf32> to vector<8x32xf32>
    %190 = vector.extract_strided_slice %187 {offsets = [0, 32], sizes = [8, 32], strides = [1, 1]} : vector<8x128xf32> to vector<8x32xf32>
    %191 = vector.extract_strided_slice %188 {offsets = [0, 64], sizes = [8, 32], strides = [1, 1]} : vector<8x128xf32> to vector<8x32xf32>
    %192 = vector.extract_strided_slice %187 {offsets = [0, 96], sizes = [8, 32], strides = [1, 1]} : vector<8x128xf32> to vector<8x32xf32>
    %193 = arith.mulf %190, %177 : vector<8x32xf32>
    %194 = arith.mulf %189, %191 : vector<8x32xf32>
    %195 = arith.addf %193, %194 : vector<8x32xf32>
    %196 = math.tanh %195 : vector<8x32xf32>
    %197 = arith.mulf %192, %196 : vector<8x32xf32>
    %198 = vector.extract_strided_slice %159 {offsets = [16, 0], sizes = [8, 128], strides = [1, 1]} : vector<64x128xf32> to vector<8x128xf32>
    %cst_38 = arith.constant dense<0.000000e+00> : vector<8x128xf32>
    %199 = tpu.matmul %197, %155, %cst_38 {dimension_numbers = #tpu.dot_dimension_numbers<[1], [0], [0], [1], [0, 0, 1, 1], [], []>} : vector<8x32xf32>, vector<32x128xf32>, vector<8x128xf32> -> vector<8x128xf32>
    %200 = arith.addf %198, %199 : vector<8x128xf32>
    %201 = arith.negf %200 : vector<8x128xf32>
    %202 = math.exp %201 : vector<8x128xf32>
    %cst_39 = arith.constant 1.000000e+00 : f32
    %203 = vector.broadcast %cst_39 : f32 to vector<8x128xf32>
    %204 = arith.addf %203, %202 : vector<8x128xf32>
    %205 = arith.divf %203, %204 : vector<8x128xf32>
    %206 = math.tanh %200 : vector<8x128xf32>
    %207 = vector.extract_strided_slice %205 {offsets = [0, 0], sizes = [8, 32], strides = [1, 1]} : vector<8x128xf32> to vector<8x32xf32>
    %208 = vector.extract_strided_slice %205 {offsets = [0, 32], sizes = [8, 32], strides = [1, 1]} : vector<8x128xf32> to vector<8x32xf32>
    %209 = vector.extract_strided_slice %206 {offsets = [0, 64], sizes = [8, 32], strides = [1, 1]} : vector<8x128xf32> to vector<8x32xf32>
    %210 = vector.extract_strided_slice %205 {offsets = [0, 96], sizes = [8, 32], strides = [1, 1]} : vector<8x128xf32> to vector<8x32xf32>
    %211 = arith.mulf %208, %195 : vector<8x32xf32>
    %212 = arith.mulf %207, %209 : vector<8x32xf32>
    %213 = arith.addf %211, %212 : vector<8x32xf32>
    %214 = math.tanh %213 : vector<8x32xf32>
    %215 = arith.mulf %210, %214 : vector<8x32xf32>
    %216 = vector.extract_strided_slice %159 {offsets = [24, 0], sizes = [8, 128], strides = [1, 1]} : vector<64x128xf32> to vector<8x128xf32>
    %cst_40 = arith.constant dense<0.000000e+00> : vector<8x128xf32>
    %217 = tpu.matmul %215, %155, %cst_40 {dimension_numbers = #tpu.dot_dimension_numbers<[1], [0], [0], [1], [0, 0, 1, 1], [], []>} : vector<8x32xf32>, vector<32x128xf32>, vector<8x128xf32> -> vector<8x128xf32>
    %218 = arith.addf %216, %217 : vector<8x128xf32>
    %219 = arith.negf %218 : vector<8x128xf32>
    %220 = math.exp %219 : vector<8x128xf32>
    %cst_41 = arith.constant 1.000000e+00 : f32
    %221 = vector.broadcast %cst_41 : f32 to vector<8x128xf32>
    %222 = arith.addf %221, %220 : vector<8x128xf32>
    %223 = arith.divf %221, %222 : vector<8x128xf32>
    %224 = math.tanh %218 : vector<8x128xf32>
    %225 = vector.extract_strided_slice %223 {offsets = [0, 0], sizes = [8, 32], strides = [1, 1]} : vector<8x128xf32> to vector<8x32xf32>
    %226 = vector.extract_strided_slice %223 {offsets = [0, 32], sizes = [8, 32], strides = [1, 1]} : vector<8x128xf32> to vector<8x32xf32>
    %227 = vector.extract_strided_slice %224 {offsets = [0, 64], sizes = [8, 32], strides = [1, 1]} : vector<8x128xf32> to vector<8x32xf32>
    %228 = vector.extract_strided_slice %223 {offsets = [0, 96], sizes = [8, 32], strides = [1, 1]} : vector<8x128xf32> to vector<8x32xf32>
    %229 = arith.mulf %226, %213 : vector<8x32xf32>
    %230 = arith.mulf %225, %227 : vector<8x32xf32>
    %231 = arith.addf %229, %230 : vector<8x32xf32>
    %232 = math.tanh %231 : vector<8x32xf32>
    %233 = arith.mulf %228, %232 : vector<8x32xf32>
    %234 = vector.extract_strided_slice %159 {offsets = [32, 0], sizes = [8, 128], strides = [1, 1]} : vector<64x128xf32> to vector<8x128xf32>
    %cst_42 = arith.constant dense<0.000000e+00> : vector<8x128xf32>
    %235 = tpu.matmul %233, %155, %cst_42 {dimension_numbers = #tpu.dot_dimension_numbers<[1], [0], [0], [1], [0, 0, 1, 1], [], []>} : vector<8x32xf32>, vector<32x128xf32>, vector<8x128xf32> -> vector<8x128xf32>
    %236 = arith.addf %234, %235 : vector<8x128xf32>
    %237 = arith.negf %236 : vector<8x128xf32>
    %238 = math.exp %237 : vector<8x128xf32>
    %cst_43 = arith.constant 1.000000e+00 : f32
    %239 = vector.broadcast %cst_43 : f32 to vector<8x128xf32>
    %240 = arith.addf %239, %238 : vector<8x128xf32>
    %241 = arith.divf %239, %240 : vector<8x128xf32>
    %242 = math.tanh %236 : vector<8x128xf32>
    %243 = vector.extract_strided_slice %241 {offsets = [0, 0], sizes = [8, 32], strides = [1, 1]} : vector<8x128xf32> to vector<8x32xf32>
    %244 = vector.extract_strided_slice %241 {offsets = [0, 32], sizes = [8, 32], strides = [1, 1]} : vector<8x128xf32> to vector<8x32xf32>
    %245 = vector.extract_strided_slice %242 {offsets = [0, 64], sizes = [8, 32], strides = [1, 1]} : vector<8x128xf32> to vector<8x32xf32>
    %246 = vector.extract_strided_slice %241 {offsets = [0, 96], sizes = [8, 32], strides = [1, 1]} : vector<8x128xf32> to vector<8x32xf32>
    %247 = arith.mulf %244, %231 : vector<8x32xf32>
    %248 = arith.mulf %243, %245 : vector<8x32xf32>
    %249 = arith.addf %247, %248 : vector<8x32xf32>
    %250 = math.tanh %249 : vector<8x32xf32>
    %251 = arith.mulf %246, %250 : vector<8x32xf32>
    %252 = vector.extract_strided_slice %159 {offsets = [40, 0], sizes = [8, 128], strides = [1, 1]} : vector<64x128xf32> to vector<8x128xf32>
    %cst_44 = arith.constant dense<0.000000e+00> : vector<8x128xf32>
    %253 = tpu.matmul %251, %155, %cst_44 {dimension_numbers = #tpu.dot_dimension_numbers<[1], [0], [0], [1], [0, 0, 1, 1], [], []>} : vector<8x32xf32>, vector<32x128xf32>, vector<8x128xf32> -> vector<8x128xf32>
    %254 = arith.addf %252, %253 : vector<8x128xf32>
    %255 = arith.negf %254 : vector<8x128xf32>
    %256 = math.exp %255 : vector<8x128xf32>
    %cst_45 = arith.constant 1.000000e+00 : f32
    %257 = vector.broadcast %cst_45 : f32 to vector<8x128xf32>
    %258 = arith.addf %257, %256 : vector<8x128xf32>
    %259 = arith.divf %257, %258 : vector<8x128xf32>
    %260 = math.tanh %254 : vector<8x128xf32>
    %261 = vector.extract_strided_slice %259 {offsets = [0, 0], sizes = [8, 32], strides = [1, 1]} : vector<8x128xf32> to vector<8x32xf32>
    %262 = vector.extract_strided_slice %259 {offsets = [0, 32], sizes = [8, 32], strides = [1, 1]} : vector<8x128xf32> to vector<8x32xf32>
    %263 = vector.extract_strided_slice %260 {offsets = [0, 64], sizes = [8, 32], strides = [1, 1]} : vector<8x128xf32> to vector<8x32xf32>
    %264 = vector.extract_strided_slice %259 {offsets = [0, 96], sizes = [8, 32], strides = [1, 1]} : vector<8x128xf32> to vector<8x32xf32>
    %265 = arith.mulf %262, %249 : vector<8x32xf32>
    %266 = arith.mulf %261, %263 : vector<8x32xf32>
    %267 = arith.addf %265, %266 : vector<8x32xf32>
    %268 = math.tanh %267 : vector<8x32xf32>
    %269 = arith.mulf %264, %268 : vector<8x32xf32>
    %270 = vector.extract_strided_slice %159 {offsets = [48, 0], sizes = [8, 128], strides = [1, 1]} : vector<64x128xf32> to vector<8x128xf32>
    %cst_46 = arith.constant dense<0.000000e+00> : vector<8x128xf32>
    %271 = tpu.matmul %269, %155, %cst_46 {dimension_numbers = #tpu.dot_dimension_numbers<[1], [0], [0], [1], [0, 0, 1, 1], [], []>} : vector<8x32xf32>, vector<32x128xf32>, vector<8x128xf32> -> vector<8x128xf32>
    %272 = arith.addf %270, %271 : vector<8x128xf32>
    %273 = arith.negf %272 : vector<8x128xf32>
    %274 = math.exp %273 : vector<8x128xf32>
    %cst_47 = arith.constant 1.000000e+00 : f32
    %275 = vector.broadcast %cst_47 : f32 to vector<8x128xf32>
    %276 = arith.addf %275, %274 : vector<8x128xf32>
    %277 = arith.divf %275, %276 : vector<8x128xf32>
    %278 = math.tanh %272 : vector<8x128xf32>
    %279 = vector.extract_strided_slice %277 {offsets = [0, 0], sizes = [8, 32], strides = [1, 1]} : vector<8x128xf32> to vector<8x32xf32>
    %280 = vector.extract_strided_slice %277 {offsets = [0, 32], sizes = [8, 32], strides = [1, 1]} : vector<8x128xf32> to vector<8x32xf32>
    %281 = vector.extract_strided_slice %278 {offsets = [0, 64], sizes = [8, 32], strides = [1, 1]} : vector<8x128xf32> to vector<8x32xf32>
    %282 = vector.extract_strided_slice %277 {offsets = [0, 96], sizes = [8, 32], strides = [1, 1]} : vector<8x128xf32> to vector<8x32xf32>
    %283 = arith.mulf %280, %267 : vector<8x32xf32>
    %284 = arith.mulf %279, %281 : vector<8x32xf32>
    %285 = arith.addf %283, %284 : vector<8x32xf32>
    %286 = math.tanh %285 : vector<8x32xf32>
    %287 = arith.mulf %282, %286 : vector<8x32xf32>
    %288 = vector.extract_strided_slice %159 {offsets = [56, 0], sizes = [8, 128], strides = [1, 1]} : vector<64x128xf32> to vector<8x128xf32>
    %cst_48 = arith.constant dense<0.000000e+00> : vector<8x128xf32>
    %289 = tpu.matmul %287, %155, %cst_48 {dimension_numbers = #tpu.dot_dimension_numbers<[1], [0], [0], [1], [0, 0, 1, 1], [], []>} : vector<8x32xf32>, vector<32x128xf32>, vector<8x128xf32> -> vector<8x128xf32>
    %290 = arith.addf %288, %289 : vector<8x128xf32>
    %291 = arith.negf %290 : vector<8x128xf32>
    %292 = math.exp %291 : vector<8x128xf32>
    %cst_49 = arith.constant 1.000000e+00 : f32
    %293 = vector.broadcast %cst_49 : f32 to vector<8x128xf32>
    %294 = arith.addf %293, %292 : vector<8x128xf32>
    %295 = arith.divf %293, %294 : vector<8x128xf32>
    %296 = math.tanh %290 : vector<8x128xf32>
    %297 = vector.extract_strided_slice %295 {offsets = [0, 0], sizes = [8, 32], strides = [1, 1]} : vector<8x128xf32> to vector<8x32xf32>
    %298 = vector.extract_strided_slice %295 {offsets = [0, 32], sizes = [8, 32], strides = [1, 1]} : vector<8x128xf32> to vector<8x32xf32>
    %299 = vector.extract_strided_slice %296 {offsets = [0, 64], sizes = [8, 32], strides = [1, 1]} : vector<8x128xf32> to vector<8x32xf32>
    %300 = vector.extract_strided_slice %295 {offsets = [0, 96], sizes = [8, 32], strides = [1, 1]} : vector<8x128xf32> to vector<8x32xf32>
    %301 = arith.mulf %298, %285 : vector<8x32xf32>
    %302 = arith.mulf %297, %299 : vector<8x32xf32>
    %303 = arith.addf %301, %302 : vector<8x32xf32>
    %304 = math.tanh %303 : vector<8x32xf32>
    %305 = arith.mulf %300, %304 : vector<8x32xf32>
    %306 = tpu.concatenate %179, %197, %215, %233, %251, %269, %287, %305 in 1 : vector<8x32xf32>, vector<8x32xf32>, vector<8x32xf32>, vector<8x32xf32>, vector<8x32xf32>, vector<8x32xf32>, vector<8x32xf32>, vector<8x32xf32> -> vector<8x256xf32>
    %c0_50 = arith.constant 0 : index
    %c0_51 = arith.constant 0 : index
    %307 = vector.load %arg8[%c0_50, %c0_51] : memref<256x4xf32, #tpu.memory_space<vmem>>, vector<256x4xf32>
    %cst_52 = arith.constant dense<0.000000e+00> : vector<8x4xf32>
    %308 = tpu.matmul %306, %307, %cst_52 {dimension_numbers = #tpu.dot_dimension_numbers<[1], [0], [0], [1], [0, 0, 1, 1], [], []>} : vector<8x256xf32>, vector<256x4xf32>, vector<8x4xf32> -> vector<8x4xf32>
    %c0_53 = arith.constant 0 : index
    %c0_54 = arith.constant 0 : index
    %309 = vector.load %arg9[%c0_53, %c0_54] : memref<1x4xf32, #tpu.memory_space<vmem>>, vector<1x4xf32>
    %310 = vector.broadcast %309 : vector<1x4xf32> to vector<8x4xf32>
    %311 = arith.addf %308, %310 : vector<8x4xf32>
    %c0_55 = arith.constant 0 : index
    %c0_56 = arith.constant 0 : index
    %312 = vector.load %arg10[%c0_55, %c0_56] : memref<8x4xf32, #tpu.memory_space<vmem>>, vector<8x4xf32>
    tpu.vector_store %arg10[%c0_55, %c0_56], %311 {strides = array<i32>} : memref<8x4xf32, #tpu.memory_space<vmem>>, vector<8x4xf32>,
    return
  }
  func.func @transform_0(%arg0: i32) -> (i32, i32) {
    %c0_i32 = arith.constant 0 : i32
    %c0_i32_0 = arith.constant 0 : i32
    %c0_i32_1 = arith.constant 0 : i32
    return %c0_i32, %c0_i32_0 : i32, i32
  }
  func.func @transform_1(%arg0: i32) -> (i32, i32) {
    %c0_i32 = arith.constant 0 : i32
    %c0_i32_0 = arith.constant 0 : i32
    %c0_i32_1 = arith.constant 0 : i32
    return %c0_i32, %c0_i32_0 : i32, i32
  }
  func.func @transform_2(%arg0: i32) -> (i32, i32) {
    %c0_i32 = arith.constant 0 : i32
    %c0_i32_0 = arith.constant 0 : i32
    %c0_i32_1 = arith.constant 0 : i32
    return %c0_i32, %c0_i32_0 : i32, i32
  }
  func.func @transform_3(%arg0: i32) -> (i32, i32) {
    %c0_i32 = arith.constant 0 : i32
    %c0_i32_0 = arith.constant 0 : i32
    %c0_i32_1 = arith.constant 0 : i32
    return %c0_i32, %c0_i32_0 : i32, i32
  }
  func.func @transform_4(%arg0: i32) -> (i32, i32) {
    %c0_i32 = arith.constant 0 : i32
    %c0_i32_0 = arith.constant 0 : i32
    %c0_i32_1 = arith.constant 0 : i32
    return %c0_i32, %c0_i32_0 : i32, i32
  }
  func.func @transform_5(%arg0: i32) -> (i32, i32) {
    %c0_i32 = arith.constant 0 : i32
    %c0_i32_0 = arith.constant 0 : i32
    %c0_i32_1 = arith.constant 0 : i32
    return %c0_i32, %c0_i32_0 : i32, i32
  }
  func.func @transform_6(%arg0: i32) -> (i32, i32) {
    %c0_i32 = arith.constant 0 : i32
    %c0_i32_0 = arith.constant 0 : i32
    %c0_i32_1 = arith.constant 0 : i32
    return %c0_i32, %c0_i32_0 : i32, i32
  }
  func.func @transform_7(%arg0: i32) -> (i32, i32) {
    %c0_i32 = arith.constant 0 : i32
    %c0_i32_0 = arith.constant 0 : i32
    %c0_i32_1 = arith.constant 0 : i32
    return %c0_i32, %c0_i32_0 : i32, i32
  }
  func.func @transform_8(%arg0: i32) -> (i32, i32) {
    %c0_i32 = arith.constant 0 : i32
    %c0_i32_0 = arith.constant 0 : i32
    %c0_i32_1 = arith.constant 0 : i32
    return %c0_i32, %c0_i32_0 : i32, i32
  }
  func.func @transform_9(%arg0: i32) -> (i32, i32) {
    %c0_i32 = arith.constant 0 : i32
    %c0_i32_0 = arith.constant 0 : i32
    %c0_i32_1 = arith.constant 0 : i32
    return %c0_i32, %c0_i32_0 : i32, i32
  }
}

</mosaic_0001>

<bundles_post_ra>
// kernel: lstm_forward.1
= control target key start
LH: loop header
LB: loop body
LE: loop exit
PB: predicated region body
PF: predicated region fallthrough
CT: control target
= control target key end

     0   :  { %vm50_vm0 = vcmask 130048   ;;  %v1472_v7 = vmov 0.0   ;;  %s1473_s23 = smov 64   ;;  %s1474_s24 = smov 32   ;;  %vm116_vm5 = vcmask 261120   ;;  %s1957_s2 = inlined_call_operand.vmem [shape: f32[32,128], index: 2, kind: input, shape index: {}]   ;;  %s1958_s1 = inlined_call_operand.vmem [shape: f32[16,128], index: 1, kind: input, shape index: {}]   ;;  %s1959_s0 = inlined_call_operand.vmem [shape: f32[64,16], index: 0, kind: input, shape index: {}]   ;;  %s1960_s3 = inlined_call_operand.vmem [shape: f32[1,128], index: 3, kind: input, shape index: {}]   ;;  %s1961_s4 = inlined_call_operand.vmem [shape: f32[32,128], index: 4, kind: input, shape index: {}]   ;;  %s1962_s6 = inlined_call_operand.vmem [shape: f32[1,128], index: 6, kind: input, shape index: {}]   ;;  %s1963_s5 = inlined_call_operand.vmem [shape: f32[32,128], index: 5, kind: input, shape index: {}]   ;;  %s1964_s7 = inlined_call_operand.vmem [shape: f32[256,4], index: 7, kind: input, shape index: {}]   ;;  %s1965_s8 = inlined_call_operand.vmem [shape: f32[1,4], index: 8, kind: input, shape index: {}]   ;;  %s1966_s9 = inlined_call_operand.vmem [shape: f32[8,4], index: 9, kind: output, shape index: {}]  }
   0x1   :  { %v1529_v0 = vld [vmem:[%s1957_s2 + $0x18] sm:$0xff]  ;;  %v1534_v1 = vld [vmem:[%s1957_s2 + $0x10] sm:$0xff]  ;;  %v41_v2 = vld [vmem:[%s1958_s1 + $0x8] sm:$0xff] }
   0x2   :  { %132 = vmatpush.msra.mxu2 %v1529_v0  ;;  %v40_v3 = vld [vmem:[%s1958_s1] sm:$0xff]  ;;  %258 = vmatpush.msra.mxu3 %v1529_v0  ;;  %v1547_v4 = vld [vmem:[%s1957_s2 + $0x8] sm:$0xff]  ;;  %v34_v63 = vld [vmem:[%s1959_s0 + $0x10] sm:$0xff] }
   0x3   :  { %89 = vmatpush.msra.mxu0 %v41_v2  ;;  %v32_v5 = vld [vmem:[%s1959_s0] sm:$0xff]  ;;  %510 = vmatpush.msra.mxu1 %v1529_v0  ;;  %v33_v35 = vld [vmem:[%s1959_s0 + $0x8] sm:$0xff] }
   0x4   :  { %133 = vmatpush.msra.mxu2 %v1534_v1  ;;  %259 = vmatpush.msra.mxu3 %v1534_v1  ;;  %v1558_v6 = vld [vmem:[%s1957_s2] sm:$0xff] }
   0x5   :  { %90 = vmatpush.msra.mxu0 %v40_v3  ;;  %511 = vmatpush.msra.mxu1 %v1534_v1  ;;  %v1584_v8 = vld [vmem:[%s1960_s3] ss:$0 sm:$0xff] }
   0x6   :  { %134 = vmatpush.msra.mxu2 %v1547_v4  ;;  %1280 = vmatmul.msk.f32.vlgmr.msra.gmra.mxu0 %vm50_vm0, %v32_v5 }
   0x7   :  { %260 = vmatpush.msra.mxu3 %v1547_v4  ;;  %512 = vmatpush.msra.mxu1 %v1547_v4 }
   0x8   :  { %135 = vmatpush.msra.mxu2 %v1558_v6 }
   0x9   :  { %136 = vmatmul.f32.vlgmr.msra.gmra.mxu2 %v1472_v7  ;;  %261 = vmatpush.msra.mxu3 %v1558_v6 }
   0xa   :  { %195 = vmatpush.msrb.mxu2 %v1529_v0  ;;  %513 = vmatpush.msra.mxu1 %v1558_v6 }
   0xb   :  { %447 = vmatpush.msrb.mxu3 %v1529_v0 }
   0xc   :  { %196 = vmatpush.msrb.mxu2 %v1534_v1 }
   0xd   :  { %448 = vmatpush.msrb.mxu3 %v1534_v1 }
   0xe   :  { %197 = vmatpush.msrb.mxu2 %v1547_v4  ;;  %1281 = vmatmul.msk.f32.gmra.mxu0 %vm50_vm0, %v33_v35 }
   0xf   :  { %449 = vmatpush.msrb.mxu3 %v1547_v4 }
  0x10   :  { %198 = vmatpush.msrb.mxu2 %v1558_v6 }
  0x11   :  { %450 = vmatpush.msrb.mxu3 %v1558_v6 }
  0x12   :  { %321 = vmatpush.msra.mxu2 %v1529_v0 }
  0x14   :  { %322 = vmatpush.msra.mxu2 %v1534_v1 }
  0x16   :  { %323 = vmatpush.msra.mxu2 %v1547_v4  ;;  %1282 = vmatmul.msk.f32.gmra.mxu0 %vm50_vm0, %v34_v63 }
  0x18   :  { %324 = vmatpush.msra.mxu2 %v1558_v6 }
  0x83   :  { %v92_v9 = vpop.f32.mrf.mxu0 }
  0x84   :  { %v93_v10 = vadd.f32 %v1584_v8, %v92_v9 }
  0x8b   :  { %v95_v37 = vpop.f32.mrf.mxu0 }
  0x8c   :  { %v137_v11 = vpop.f32.mrf.mxu2  ;;  %v96_v38 = vadd.f32 %v1584_v8, %v95_v37 }
  0x8d   :  { %v140_v12 = vadd.f32 %v137_v11, %v93_v10 }
  0x8f   :  { %1343 = vtanh.f32 %v140_v12  ;;  %v1288_v14 = vmul.f32 -1.442695, %v140_v12 }
  0x91   :  { %1345 = vpow2.f32 %v1288_v14 }
  0x93   :  { %v98_v3 = vpop.f32.mrf.mxu0 }
  0x94   :  { %v99_v5 = vadd.f32 %v1584_v8, %v98_v3 }
  0x95   :  { %v1344_v13 = vpop.eup %1343 }
  0x96   :  { %163 = vrot.lane.b32.xlu0 %v1344_v13, %s1473_s23 }
  0x97   :  { %v1346_v15 = vpop.eup %1345 }
  0x98   :  { %v144_v16 = vadd.f32 1.0, %v1346_v15 }
  0x9a   :  { %1347 = vrcp.f32 %v144_v16  ;;  %v156_v22 = vand.u32 2147483648, %v144_v16  ;;  %vm150_vm2 = vweird.f32 %v144_v16  ;;  %v154_v23 = vand.u32 2147483647, %v144_v16 }
  0x9c   :  { %v157_v25 = vor.u32 1.1754944e-38, %v156_v22  ;;  %vm155_vm4 = vcmp.eq.f32.partialorder %v154_v23, 8.507059e+37 }
  0xa0   :  { %v1348_v17 = vpop.eup %1347 }
  0xa1   :  { %v146_v18 = vmul.f32 %v1348_v17, %v144_v16  ;;  %vm151_vm1 = vweird.f32 %v1348_v17 }
  0xa2   :  { %vm152_vm3 = vmor %vm150_vm2, %vm151_vm1 }
  0xa3   :  { %v147_v19 = vsub.f32 1.0, %v146_v18 }
  0xa5   :  { %v148_v20 = vmul.f32 %v1348_v17, %v147_v19 }
  0xa7   :  { %v149_v21 = vadd.f32 %v1348_v17, %v148_v20 }
  0xa9   :  { %v153_v24 = vsel %vm152_vm3, %v1348_v17, %v149_v21 }
  0xaa   :  { %v158_v27 = vsel %vm155_vm4, %v157_v25, %v153_v24 }
  0xab   :  { %v161_v29 = vmul.f32 0.0, %v158_v27 }
 0x108   :  { %v164_v26 = vpop.permute.xlu0 %163 }
 0x109   :  { %v166_v28 = vmul.f32 %v164_v26, %v158_v27 }
 0x10b   :  { %168 = vrot.lane.b32.xlu0 %v166_v28, %s1474_s24 }
 0x17d   :  { %v169_v30 = vpop.permute.xlu0 %168 }
 0x17e   :  { %v171_v31 = vadd.f32 %v169_v30, %v161_v29 }
 0x180   :  { %1349 = vtanh.f32 %v171_v31 }
 0x186   :  { %v1350_v32 = vpop.eup %1349 }
 0x187   :  { %174 = vrot.lane.b32.xlu1 %v1350_v32, %s1473_s23 }
 0x1f9   :  { %v175_v33 = vpop.permute.xlu1 %174 }
 0x1fa   :  { %v177_v34 = vmul.f32 %v175_v33, %v158_v27  ;;  %v35_v33 = vld [vmem:[%s1959_s0 + $0x18] sm:$0xff] }
 0x1fb   :  { %1283 = vmatmul.msk.f32.gmra.mxu0 %vm50_vm0, %v35_v33  ;;  %v619_v33 = vld [vmem:[%s1961_s4] sm:$0xff] }
 0x1fc   :  { %179 = vrot.lane.b32.xlu1 %v177_v34, %s1474_s24 }
 0x26e   :  { %v1595_v36 = vpop.permute.xlu1 %179 }
 0x26f   :  { %1289 = vmatmul.msk.f32.vlgmr.msrb.gmra.mxu2 %vm116_vm5, %v1595_v36 }
 0x270   :  { %384 = vmatpush.msrb.mxu2 %v1529_v0 }
 0x272   :  { %385 = vmatpush.msrb.mxu2 %v1534_v1 }
 0x274   :  { %386 = vmatpush.msrb.mxu2 %v1547_v4 }
 0x276   :  { %387 = vmatpush.msrb.mxu2 %v1558_v6 }
 0x278   :  { %v101_v35 = vpop.f32.mrf.mxu0 }
 0x279   :  { %v102_v37 = vadd.f32 %v1584_v8, %v101_v35 }
 0x2f2   :  { %v200_v39 = vpop.f32.mrf.mxu2 }
 0x2f3   :  { %v203_v40 = vadd.f32 %v200_v39, %v96_v38 }
 0x2f5   :  { %1351 = vtanh.f32 %v203_v40  ;;  %v1290_v42 = vmul.f32 -1.442695, %v203_v40 }
 0x2f7   :  { %1353 = vpow2.f32 %v1290_v42 }
 0x2fb   :  { %v1352_v41 = vpop.eup %1351 }
 0x2fc   :  { %226 = vrot.lane.b32.xlu2 %v1352_v41, %s1473_s23 }
 0x2fd   :  { %v1354_v43 = vpop.eup %1353 }
 0x2fe   :  { %v207_v44 = vadd.f32 1.0, %v1354_v43 }
 0x300   :  { %1355 = vrcp.f32 %v207_v44  ;;  %v219_v50 = vand.u32 2147483648, %v207_v44  ;;  %vm213_vm7 = vweird.f32 %v207_v44  ;;  %v217_v51 = vand.u32 2147483647, %v207_v44 }
 0x302   :  { %v220_v53 = vor.u32 1.1754944e-38, %v219_v50  ;;  %vm218_vm9 = vcmp.eq.f32.partialorder %v217_v51, 8.507059e+37 }
 0x306   :  { %v1356_v45 = vpop.eup %1355 }
 0x307   :  { %v209_v46 = vmul.f32 %v1356_v45, %v207_v44  ;;  %vm214_vm6 = vweird.f32 %v1356_v45 }
 0x308   :  { %vm215_vm8 = vmor %vm213_vm7, %vm214_vm6 }
 0x309   :  { %v210_v47 = vsub.f32 1.0, %v209_v46 }
 0x30b   :  { %v211_v48 = vmul.f32 %v1356_v45, %v210_v47 }
 0x30d   :  { %v212_v49 = vadd.f32 %v1356_v45, %v211_v48 }
 0x30f   :  { %v216_v52 = vsel %vm215_vm8, %v1356_v45, %v212_v49 }
 0x310   :  { %v221_v55 = vsel %vm218_vm9, %v220_v53, %v216_v52 }
 0x311   :  { %v224_v57 = vmul.f32 %v221_v55, %v171_v31 }
 0x356   :  { %v227_v54 = vpop.permute.xlu2 %226 }
 0x357   :  { %v229_v56 = vmul.f32 %v227_v54, %v221_v55 }
 0x359   :  { %231 = vrot.lane.b32.xlu2 %v229_v56, %s1474_s24 }
 0x3b3   :  { %v232_v58 = vpop.permute.xlu2 %231 }
 0x3b4   :  { %v234_v59 = vadd.f32 %v232_v58, %v224_v57  ;;  %v36_v58 = vld [vmem:[%s1959_s0 + $0x20] sm:$0xff] }
 0x3b5   :  { %1284 = vmatmul.msk.f32.gmra.mxu0 %vm50_vm0, %v36_v58  ;;  %v1693_v58 = vld [vmem:[%s1963_s5 + $0x10] sm:$0xff] }
 0x3b6   :  { %1357 = vtanh.f32 %v234_v59 }
 0x3bc   :  { %v1358_v60 = vpop.eup %1357 }
 0x3bd   :  { %237 = vrot.lane.b32.xlu0 %v1358_v60, %s1473_s23 }
 0x42f   :  { %v238_v61 = vpop.permute.xlu0 %237 }
 0x430   :  { %v240_v62 = vmul.f32 %v238_v61, %v221_v55 }
 0x432   :  { %242 = vrot.lane.b32.xlu1 %v240_v62, %s1474_s24  ;;  %v104_v60 = vpop.f32.mrf.mxu0 }
 0x433   :  { %v105_v61 = vadd.f32 %v1584_v8, %v104_v60  ;;  %v1707_v60 = vld [vmem:[%s1963_s5] sm:$0xff] }
 0x4a4   :  { %v1612_v2 = vpop.permute.xlu1 %242 }
 0x4a5   :  { %1291 = vmatmul.msk.f32.vlgmr.msra.gmra.mxu3 %vm116_vm5, %v1612_v2 }
 0x528   :  { %v263_v9 = vpop.f32.mrf.mxu3 }
 0x529   :  { %v266_v10 = vadd.f32 %v263_v9, %v99_v5 }
 0x52b   :  { %1359 = vtanh.f32 %v266_v10  ;;  %v1292_v12 = vmul.f32 -1.442695, %v266_v10 }
 0x52d   :  { %1361 = vpow2.f32 %v1292_v12 }
 0x531   :  { %v1360_v11 = vpop.eup %1359 }
 0x532   :  { %289 = vrot.lane.b32.xlu2 %v1360_v11, %s1473_s23 }
 0x533   :  { %v1362_v13 = vpop.eup %1361 }
 0x534   :  { %v270_v14 = vadd.f32 1.0, %v1362_v13 }
 0x536   :  { %1363 = vrcp.f32 %v270_v14  ;;  %v282_v20 = vand.u32 2147483648, %v270_v14  ;;  %vm276_vm11 = vweird.f32 %v270_v14  ;;  %v280_v21 = vand.u32 2147483647, %v270_v14 }
 0x538   :  { %v283_v23 = vor.u32 1.1754944e-38, %v282_v20  ;;  %vm281_vm13 = vcmp.eq.f32.partialorder %v280_v21, 8.507059e+37 }
 0x53c   :  { %v1364_v15 = vpop.eup %1363 }
 0x53d   :  { %v272_v16 = vmul.f32 %v1364_v15, %v270_v14  ;;  %vm277_vm10 = vweird.f32 %v1364_v15 }
 0x53e   :  { %vm278_vm12 = vmor %vm276_vm11, %vm277_vm10 }
 0x53f   :  { %v273_v17 = vsub.f32 1.0, %v272_v16 }
 0x541   :  { %v274_v18 = vmul.f32 %v1364_v15, %v273_v17 }
 0x543   :  { %v275_v19 = vadd.f32 %v1364_v15, %v274_v18 }
 0x545   :  { %v279_v22 = vsel %vm278_vm12, %v1364_v15, %v275_v19 }
 0x546   :  { %v284_v25 = vsel %vm281_vm13, %v283_v23, %v279_v22 }
 0x547   :  { %v287_v27 = vmul.f32 %v284_v25, %v234_v59 }
 0x58c   :  { %v290_v24 = vpop.permute.xlu2 %289 }
 0x58d   :  { %v292_v26 = vmul.f32 %v290_v24, %v284_v25 }
 0x58f   :  { %294 = vrot.lane.b32.xlu0 %v292_v26, %s1474_s24 }
 0x601   :  { %v295_v28 = vpop.permute.xlu0 %294 }
 0x602   :  { %v297_v29 = vadd.f32 %v295_v28, %v287_v27 }
 0x604   :  { %1365 = vtanh.f32 %v297_v29 }
 0x60a   :  { %v1366_v30 = vpop.eup %1365 }
 0x60b   :  { %300 = vrot.lane.b32.xlu1 %v1366_v30, %s1473_s23  ;;  %v621_v30 = vld [vmem:[%s1961_s4 + $0x10] sm:$0xff] }
 0x67d   :  { %v301_v31 = vpop.permute.xlu1 %300 }
 0x67e   :  { %v303_v32 = vmul.f32 %v301_v31, %v284_v25  ;;  %v37_v31 = vld [vmem:[%s1959_s0 + $0x28] sm:$0xff] }
 0x67f   :  { %1285 = vmatmul.msk.f32.gmra.mxu0 %vm50_vm0, %v37_v31 }
 0x680   :  { %305 = vrot.lane.b32.xlu2 %v303_v32, %s1474_s24  ;;  %v620_v32 = vld [vmem:[%s1961_s4 + $0x8] sm:$0xff] }
 0x6da   :  { %v1625_v34 = vpop.permute.xlu2 %305 }
 0x6db   :  { %1293 = vmatmul.msk.f32.vlgmr.msra.gmra.mxu2 %vm116_vm5, %v1625_v34 }
 0x6dc   :  { %573 = vmatpush.msra.mxu2 %v1529_v0 }
 0x6de   :  { %574 = vmatpush.msra.mxu2 %v1534_v1 }
 0x6e0   :  { %575 = vmatpush.msra.mxu2 %v1547_v4 }
 0x6e2   :  { %576 = vmatpush.msra.mxu2 %v1558_v6 }
 0x75e   :  { %v326_v38 = vpop.f32.mrf.mxu2 }
 0x75f   :  { %v329_v39 = vadd.f32 %v326_v38, %v102_v37  ;;  %v107_v37 = vpop.f32.mrf.mxu0 }
 0x760   :  { %v108_v38 = vadd.f32 %v1584_v8, %v107_v37 }
 0x761   :  { %1367 = vtanh.f32 %v329_v39  ;;  %v1294_v41 = vmul.f32 -1.442695, %v329_v39 }
 0x763   :  { %1369 = vpow2.f32 %v1294_v41 }
 0x767   :  { %v1368_v40 = vpop.eup %1367 }
 0x768   :  { %352 = vrot.lane.b32.xlu0 %v1368_v40, %s1473_s23 }
 0x769   :  { %v1370_v42 = vpop.eup %1369 }
 0x76a   :  { %v333_v43 = vadd.f32 1.0, %v1370_v42 }
 0x76c   :  { %1371 = vrcp.f32 %v333_v43  ;;  %v345_v6 = vand.u32 2147483648, %v333_v43  ;;  %vm339_vm15 = vweird.f32 %v333_v43  ;;  %v343_v46 = vand.u32 2147483647, %v333_v43 }
 0x76e   :  { %v346_v48 = vor.u32 1.1754944e-38, %v345_v6  ;;  %vm344_vm2 = vcmp.eq.f32.partialorder %v343_v46, 8.507059e+37 }
 0x772   :  { %v1372_v0 = vpop.eup %1371 }
 0x773   :  { %v335_v1 = vmul.f32 %v1372_v0, %v333_v43  ;;  %vm340_vm14 = vweird.f32 %v1372_v0 }
 0x774   :  { %vm341_vm1 = vmor %vm339_vm15, %vm340_vm14 }
 0x775   :  { %v336_v44 = vsub.f32 1.0, %v335_v1 }
 0x777   :  { %v337_v4 = vmul.f32 %v1372_v0, %v336_v44 }
 0x779   :  { %v338_v45 = vadd.f32 %v1372_v0, %v337_v4 }
 0x77b   :  { %v342_v47 = vsel %vm341_vm1, %v1372_v0, %v338_v45 }
 0x77c   :  { %v347_v50 = vsel %vm344_vm2, %v346_v48, %v342_v47 }
 0x77d   :  { %v350_v52 = vmul.f32 %v347_v50, %v297_v29  ;;  %v622_v29 = vld [vmem:[%s1961_s4 + $0x18] sm:$0xff] }
 0x77e   :  { %648 = vmatpush.msra.mxu3 %v622_v29 }
 0x780   :  { %649 = vmatpush.msra.mxu3 %v621_v30 }
 0x782   :  { %650 = vmatpush.msra.mxu3 %v620_v32 }
 0x784   :  { %651 = vmatpush.msra.mxu3 %v619_v33 }
 0x7da   :  { %v353_v49 = vpop.permute.xlu0 %352 }
 0x7db   :  { %v355_v51 = vmul.f32 %v353_v49, %v347_v50 }
 0x7dd   :  { %357 = vrot.lane.b32.xlu1 %v355_v51, %s1474_s24 }
 0x84f   :  { %v358_v53 = vpop.permute.xlu1 %357 }
 0x850   :  { %v360_v54 = vadd.f32 %v358_v53, %v350_v52 }
 0x852   :  { %1373 = vtanh.f32 %v360_v54 }
 0x858   :  { %v1374_v55 = vpop.eup %1373 }
 0x859   :  { %363 = vrot.lane.b32.xlu2 %v1374_v55, %s1473_s23 }
 0x8b3   :  { %v364_v56 = vpop.permute.xlu2 %363 }
 0x8b4   :  { %v366_v57 = vmul.f32 %v364_v56, %v347_v50 }
 0x8b6   :  { %368 = vrot.lane.b32.xlu0 %v366_v57, %s1474_s24  ;;  %v1688_v57 = vld [vmem:[%s1963_s5 + $0x18] sm:$0xff] }
 0x8b7   :  { %689 = vmatpush.msrb.mxu1 %v1688_v57 }
 0x8b9   :  { %690 = vmatpush.msrb.mxu1 %v1693_v58 }
 0x928   :  { %v369_v59 = vpop.permute.xlu0 %368 }
 0x929   :  { %1295 = vmatmul.msk.f32.vlgmr.msrb.gmra.mxu2 %vm116_vm5, %v369_v59 }
 0x92a   :  { %752 = vmatpush.msrb.mxu2 %v1688_v57 }
 0x92c   :  { %753 = vmatpush.msrb.mxu2 %v1693_v58 }
 0x9ac   :  { %v389_v62 = vpop.f32.mrf.mxu2 }
 0x9ad   :  { %v392_v63 = vadd.f32 %v389_v62, %v105_v61 }
 0x9af   :  { %1375 = vtanh.f32 %v392_v63  ;;  %v1296_v5 = vmul.f32 -1.442695, %v392_v63 }
 0x9b1   :  { %1377 = vpow2.f32 %v1296_v5 }
 0x9b5   :  { %v1376_v3 = vpop.eup %1375 }
 0x9b6   :  { %415 = vrot.lane.b32.xlu1 %v1376_v3, %s1473_s23 }
 0x9b7   :  { %v1378_v9 = vpop.eup %1377 }
 0x9b8   :  { %v396_v10 = vadd.f32 1.0, %v1378_v9  ;;  %v1728_v9 = vld [vmem:[%s1962_s6] ss:$0 sm:$0xff] }
 0x9ba   :  { %1379 = vrcp.f32 %v396_v10  ;;  %v408_v16 = vand.u32 2147483648, %v396_v10  ;;  %vm402_vm4 = vweird.f32 %v396_v10  ;;  %v406_v17 = vand.u32 2147483647, %v396_v10 }
 0x9bc   :  { %v409_v19 = vor.u32 1.1754944e-38, %v408_v16  ;;  %vm407_vm7 = vcmp.eq.f32.partialorder %v406_v17, 8.507059e+37 }
 0x9c0   :  { %v1380_v11 = vpop.eup %1379 }
 0x9c1   :  { %v398_v12 = vmul.f32 %v1380_v11, %v396_v10  ;;  %vm403_vm3 = vweird.f32 %v1380_v11 }
 0x9c2   :  { %vm404_vm6 = vmor %vm402_vm4, %vm403_vm3 }
 0x9c3   :  { %v399_v13 = vsub.f32 1.0, %v398_v12 }
 0x9c5   :  { %v400_v14 = vmul.f32 %v1380_v11, %v399_v13 }
 0x9c7   :  { %v401_v15 = vadd.f32 %v1380_v11, %v400_v14 }
 0x9c9   :  { %v405_v18 = vsel %vm404_vm6, %v1380_v11, %v401_v15 }
 0x9ca   :  { %v410_v21 = vsel %vm407_vm7, %v409_v19, %v405_v18 }
 0x9cb   :  { %v413_v23 = vmul.f32 %v410_v21, %v360_v54  ;;  %v38_v54 = vld [vmem:[%s1959_s0 + $0x30] sm:$0xff] }
 0x9cc   :  { %1286 = vmatmul.msk.f32.gmra.mxu0 %vm50_vm0, %v38_v54 }
 0xa28   :  { %v416_v20 = vpop.permute.xlu1 %415 }
 0xa29   :  { %v418_v22 = vmul.f32 %v416_v20, %v410_v21 }
 0xa2b   :  { %420 = vrot.lane.b32.xlu2 %v418_v22, %s1474_s24 }
 0xa49   :  { %v110_v62 = vpop.f32.mrf.mxu0 }
 0xa4a   :  { %v111_v63 = vadd.f32 %v1584_v8, %v110_v62 }
 0xa85   :  { %v421_v24 = vpop.permute.xlu2 %420 }
 0xa86   :  { %v423_v25 = vadd.f32 %v421_v24, %v413_v23 }
 0xa88   :  { %1381 = vtanh.f32 %v423_v25 }
 0xa8e   :  { %v1382_v26 = vpop.eup %1381 }
 0xa8f   :  { %426 = vrot.lane.b32.xlu0 %v1382_v26, %s1473_s23 }
 0xb01   :  { %v427_v27 = vpop.permute.xlu0 %426 }
 0xb02   :  { %v429_v28 = vmul.f32 %v427_v27, %v410_v21 }
 0xb04   :  { %431 = vrot.lane.b32.xlu1 %v429_v28, %s1474_s24 }
 0xb76   :  { %v432_v35 = vpop.permute.xlu1 %431 }
 0xb77   :  { %1297 = vmatmul.msk.f32.vlgmr.msrb.gmra.mxu3 %vm116_vm5, %v432_v35 }
 0xb7f   :  { %1303 = vmatmul.msk.f32.vlgmr.msra.gmra.mxu3 %vm116_vm5, %v1595_v36 }
 0xb87   :  { %1304 = vmatmul.msk.f32.gmra.mxu3 %vm116_vm5, %v1612_v2 }
 0xb8f   :  { %1305 = vmatmul.msk.f32.gmra.mxu3 %vm116_vm5, %v1625_v34 }
 0xb97   :  { %1306 = vmatmul.msk.f32.gmra.mxu3 %vm116_vm5, %v369_v59  ;;  %v1700_v59 = vld [vmem:[%s1963_s5 + $0x8] sm:$0xff]  ;;  %s1475_s5 = smov 96  }
 0xb98   :  { %691 = vmatpush.msrb.mxu1 %v1700_v59  ;;  %754 = vmatpush.msrb.mxu2 %v1700_v59 }
 0xb9a   :  { %692 = vmatpush.msrb.mxu1 %v1707_v60  ;;  %755 = vmatpush.msrb.mxu2 %v1707_v60 }
 0xb9f   :  { %1307 = vmatmul.msk.f32.gmra.mxu3 %vm116_vm5, %v432_v35 }
 0xbfa   :  { %v452_v39 = vpop.f32.mrf.mxu3 }
 0xbfb   :  { %v455_v40 = vadd.f32 %v452_v39, %v108_v38 }
 0xbfd   :  { %1383 = vtanh.f32 %v455_v40  ;;  %v1298_v36 = vmul.f32 -1.442695, %v455_v40 }
 0xbff   :  { %1385 = vpow2.f32 %v1298_v36 }
 0xc03   :  { %v1384_v41 = vpop.eup %1383 }
 0xc04   :  { %478 = vrot.lane.b32.xlu2 %v1384_v41, %s1473_s23 }
 0xc05   :  { %v1386_v42 = vpop.eup %1385 }
 0xc06   :  { %v459_v2 = vadd.f32 1.0, %v1386_v42 }
 0xc08   :  { %1387 = vrcp.f32 %v459_v2  ;;  %v471_v4 = vand.u32 2147483648, %v459_v2  ;;  %vm465_vm9 = vweird.f32 %v459_v2  ;;  %v469_v45 = vand.u32 2147483647, %v459_v2 }
 0xc0a   :  { %v472_v46 = vor.u32 1.1754944e-38, %v471_v4  ;;  %vm470_vm11 = vcmp.eq.f32.partialorder %v469_v45, 8.507059e+37 }
 0xc0e   :  { %v1388_v43 = vpop.eup %1387 }
 0xc0f   :  { %v461_v34 = vmul.f32 %v1388_v43, %v459_v2  ;;  %vm466_vm8 = vweird.f32 %v1388_v43 }
 0xc10   :  { %vm467_vm10 = vmor %vm465_vm9, %vm466_vm8 }
 0xc11   :  { %v462_v0 = vsub.f32 1.0, %v461_v34 }
 0xc13   :  { %v463_v1 = vmul.f32 %v1388_v43, %v462_v0 }
 0xc15   :  { %v464_v44 = vadd.f32 %v1388_v43, %v463_v1 }
 0xc17   :  { %v468_v6 = vsel %vm467_vm10, %v1388_v43, %v464_v44 }
 0xc18   :  { %v473_v48 = vsel %vm470_vm11, %v472_v46, %v468_v6 }
 0xc19   :  { %v476_v50 = vmul.f32 %v473_v48, %v423_v25 }
 0xc5e   :  { %v479_v47 = vpop.permute.xlu2 %478 }
 0xc5f   :  { %v481_v49 = vmul.f32 %v479_v47, %v473_v48 }
 0xc61   :  { %483 = vrot.lane.b32.xlu0 %v481_v49, %s1474_s24 }
 0xcd3   :  { %v484_v51 = vpop.permute.xlu0 %483 }
 0xcd4   :  { %v1676_v52 = vadd.f32 %v484_v51, %v476_v50  ;;  %v39_v51 = vld [vmem:[%s1959_s0 + $0x38] sm:$0xff] }
 0xcd5   :  { %1287 = vmatmul.msk.f32.gmra.mxu0 %vm50_vm0, %v39_v51 }
 0xcd6   :  { %1389 = vtanh.f32 %v1676_v52 }
 0xcdc   :  { %v1390_v53 = vpop.eup %1389 }
 0xcdd   :  { %489 = vrot.lane.b32.xlu1 %v1390_v53, %s1473_s23 }
 0xd4f   :  { %v490_v55 = vpop.permute.xlu1 %489 }
 0xd50   :  { %v492_v56 = vmul.f32 %v490_v55, %v473_v48 }
 0xd52   :  { %494 = vrot.lane.b32.xlu2 %v492_v56, %s1474_s24 }
 0xdac   :  { %v495_v61 = vpop.permute.xlu2 %494 }
 0xdad   :  { %1299 = vmatmul.msk.f32.vlgmr.msra.gmra.mxu1 %vm116_vm5, %v495_v61  ;;  %1308 = vmatmul.msk.f32.gmra.mxu3 %vm116_vm5, %v495_v61 }
 0xdae   :  { %815 = vmatpush.msra.mxu1 %v1688_v57 }
 0xdb0   :  { %816 = vmatpush.msra.mxu1 %v1693_v58 }
 0xdb2   :  { %817 = vmatpush.msra.mxu1 %v1700_v59 }
 0xdb4   :  { %818 = vmatpush.msra.mxu1 %v1707_v60 }
 0xdb5   :  { %693 = vmatmul.f32.vlgmr.msrb.gmra.mxu1 %v1472_v7  ;;  %v653_v7 = vpop.f32.mrf.mxu3 }
 0xdb6   :  { %941 = vmatpush.msrb.mxu1 %v1688_v57  ;;  %v654_v10 = vadd.f32 %v1728_v9, %v653_v7 }
 0xdb8   :  { %942 = vmatpush.msrb.mxu1 %v1693_v58 }
 0xdba   :  { %943 = vmatpush.msrb.mxu1 %v1700_v59 }
 0xdbc   :  { %944 = vmatpush.msrb.mxu1 %v1707_v60 }
 0xdbd   :  { %v656_v55 = vpop.f32.mrf.mxu3 }
 0xdbe   :  { %v657_v56 = vadd.f32 %v1728_v9, %v656_v55 }
 0xe2a   :  { %v515_v3 = vpop.f32.mrf.mxu1 }
 0xe2b   :  { %v518_v5 = vadd.f32 %v515_v3, %v111_v63 }
 0xe2d   :  { %1391 = vtanh.f32 %v518_v5  ;;  %v1300_v8 = vmul.f32 -1.442695, %v518_v5 }
 0xe32   :  { %v694_v11 = vpop.f32.mrf.mxu1 }
 0xe33   :  { %v1392_v12 = vpop.eup %1391  ;;  %v697_v13 = vadd.f32 %v694_v11, %v654_v10 }
 0xe34   :  { %541 = vrot.lane.b32.xlu0 %v1392_v12, %s1473_s23 }
 0xe35   :  { %1393 = vtanh.f32 %v697_v13  ;;  %v1311_v15 = vmul.f32 -1.442695, %v697_v13 }
 0xe36   :  { %1395 = vpow2.f32 %v1300_v8 }
 0xe37   :  { %1397 = vpow2.f32 %v1311_v15 }
 0xe3b   :  { %v1394_v14 = vpop.eup %1393 }
 0xe3c   :  { %720 = vrot.lane.b32.xlu1 %v1394_v14, %s1473_s23  ;;  %v1396_v16 = vpop.eup %1395 }
 0xe3d   :  { %v522_v17 = vadd.f32 1.0, %v1396_v16  ;;  %v1398_v18 = vpop.eup %1397 }
 0xe3e   :  { %v701_v19 = vadd.f32 1.0, %v1398_v18 }
 0xe3f   :  { %1399 = vrcp.f32 %v522_v17  ;;  %v534_v28 = vand.u32 2147483648, %v522_v17  ;;  %vm528_vm13 = vweird.f32 %v522_v17  ;;  %v532_v29 = vand.u32 2147483647, %v522_v17 }
 0xe40   :  { %1401 = vrcp.f32 %v701_v19  ;;  %v713_v39 = vand.u32 2147483648, %v701_v19  ;;  %vm707_vm2 = vweird.f32 %v701_v19  ;;  %v711_v40 = vand.u32 2147483647, %v701_v19 }
 0xe41   :  { %v535_v32 = vor.u32 1.1754944e-38, %v534_v28  ;;  %vm533_vm15 = vcmp.eq.f32.partialorder %v532_v29, 8.507059e+37  ;;  %v659_v28 = vpop.f32.mrf.mxu3 }
 0xe42   :  { %v714_v36 = vor.u32 1.1754944e-38, %v713_v39  ;;  %vm712_vm4 = vcmp.eq.f32.partialorder %v711_v40, 8.507059e+37  ;;  %v660_v29 = vadd.f32 %v1728_v9, %v659_v28 }
 0xe45   :  { %v1400_v20 = vpop.eup %1399 }
 0xe46   :  { %v524_v21 = vmul.f32 %v1400_v20, %v522_v17  ;;  %v1402_v23 = vpop.eup %1401  ;;  %vm529_vm12 = vweird.f32 %v1400_v20 }
 0xe47   :  { %v703_v25 = vmul.f32 %v1402_v23, %v701_v19  ;;  %vm530_vm14 = vmor %vm528_vm13, %vm529_vm12  ;;  %vm708_vm1 = vweird.f32 %v1402_v23 }
 0xe48   :  { %v525_v22 = vsub.f32 1.0, %v524_v21  ;;  %vm709_vm3 = vmor %vm707_vm2, %vm708_vm1 }
 0xe49   :  { %v704_v27 = vsub.f32 1.0, %v703_v25  ;;  %v662_v51 = vpop.f32.mrf.mxu3 }
 0xe4a   :  { %v526_v24 = vmul.f32 %v1400_v20, %v525_v22 }
 0xe4b   :  { %v705_v31 = vmul.f32 %v1402_v23, %v704_v27 }
 0xe4c   :  { %v527_v26 = vadd.f32 %v1400_v20, %v526_v24 }
 0xe4d   :  { %v706_v38 = vadd.f32 %v1402_v23, %v705_v31 }
 0xe4e   :  { %v531_v30 = vsel %vm530_vm14, %v1400_v20, %v527_v26 }
 0xe4f   :  { %v536_v35 = vsel %vm533_vm15, %v535_v32, %v531_v30  ;;  %v710_v41 = vsel %vm709_vm3, %v1402_v23, %v706_v38 }
 0xe50   :  { %v715_v2 = vsel %vm712_vm4, %v714_v36, %v710_v41  ;;  %v539_v34 = vmul.f32 %v536_v35, %v1676_v52 }
 0xe51   :  { %v718_v4 = vmul.f32 0.0, %v715_v2 }
 0xea6   :  { %v542_v33 = vpop.permute.xlu0 %541 }
 0xea7   :  { %v544_v37 = vmul.f32 %v542_v33, %v536_v35 }
 0xea9   :  { %546 = vrot.lane.b32.xlu2 %v544_v37, %s1474_s24 }
 0xeae   :  { %v721_v42 = vpop.permute.xlu1 %720 }
 0xeaf   :  { %v723_v43 = vmul.f32 %v721_v42, %v715_v2 }
 0xeb1   :  { %725 = vrot.lane.b32.xlu0 %v723_v43, %s1474_s24 }
 0xf03   :  { %v547_v0 = vpop.permute.xlu2 %546 }
 0xf04   :  { %v1736_v1 = vadd.f32 %v547_v0, %v539_v34 }
 0xf06   :  { %1403 = vtanh.f32 %v1736_v1 }
 0xf0c   :  { %v1404_v44 = vpop.eup %1403 }
 0xf0d   :  { %552 = vrot.lane.b32.xlu1 %v1404_v44, %s1473_s23 }
 0xf23   :  { %v726_v45 = vpop.permute.xlu0 %725 }
 0xf24   :  { %v728_v6 = vadd.f32 %v726_v45, %v718_v4 }
 0xf26   :  { %1405 = vtanh.f32 %v728_v6 }
 0xf2c   :  { %v1406_v46 = vpop.eup %1405 }
 0xf2d   :  { %731 = vrot.lane.b32.xlu2 %v1406_v46, %s1473_s23 }
 0xf7f   :  { %v553_v47 = vpop.permute.xlu1 %552 }
 0xf80   :  { %v555_v48 = vmul.f32 %v553_v47, %v536_v35 }
 0xf82   :  { %557 = vrot.lane.b32.xlu0 %v555_v48, %s1474_s24 }
 0xf87   :  { %v732_v49 = vpop.permute.xlu2 %731 }
 0xf88   :  { %v734_v50 = vmul.f32 %v732_v49, %v715_v2 }
 0xf8a   :  { %736 = vrot.lane.b32.xlu1 %v734_v50, %s1474_s24 }
 0xff4   :  { %v558_v52 = vpop.permute.xlu0 %557 }
 0xff5   :  { %1301 = vmatmul.msk.f32.vlgmr.msra.gmra.mxu2 %vm116_vm5, %v558_v52  ;;  %1309 = vmatmul.msk.f32.gmra.mxu3 %vm116_vm5, %v558_v52  ;;  %v663_v52 = vadd.f32 %v1728_v9, %v662_v51 }
 0xff6   :  { %878 = vmatpush.msra.mxu2 %v1688_v57 }
 0xff8   :  { %879 = vmatpush.msra.mxu2 %v1693_v58 }
 0xffa   :  { %880 = vmatpush.msra.mxu2 %v1700_v59 }
 0xffc   :  { %v1752_v53 = vpop.permute.xlu1 %736  ;;  %881 = vmatpush.msra.mxu2 %v1707_v60 }
 0xffd   :  { %1312 = vmatmul.msk.f32.vlgmr.msrb.gmra.mxu2 %vm116_vm5, %v1752_v53 }
 0xffe   :  { %1004 = vmatpush.msrb.mxu2 %v1688_v57 }
0x1000   :  { %1005 = vmatpush.msrb.mxu2 %v1693_v58 }
0x1002   :  { %1006 = vmatpush.msrb.mxu2 %v1700_v59 }
0x1004   :  { %1007 = vmatpush.msrb.mxu2 %v1707_v60 }
0x1078   :  { %v1761_v54 = vpop.f32.mrf.mxu2 }
0x1080   :  { %v757_v61 = vpop.f32.mrf.mxu2 }
0x1081   :  { %v760_v62 = vadd.f32 %v757_v61, %v657_v56 }
0x1083   :  { %1407 = vtanh.f32 %v760_v62  ;;  %v1313_v3 = vmul.f32 -1.442695, %v760_v62 }
0x1085   :  { %1409 = vpow2.f32 %v1313_v3 }
0x1089   :  { %v1408_v63 = vpop.eup %1407 }
0x108a   :  { %783 = vrot.lane.b32.xlu2 %v1408_v63, %s1473_s23 }
0x108b   :  { %v1410_v5 = vpop.eup %1409 }
0x108c   :  { %v764_v7 = vadd.f32 1.0, %v1410_v5 }
0x108e   :  { %1411 = vrcp.f32 %v764_v7  ;;  %v776_v8 = vand.u32 2147483648, %v764_v7  ;;  %vm770_vm6 = vweird.f32 %v764_v7  ;;  %v774_v15 = vand.u32 2147483647, %v764_v7 }
0x1090   :  { %v777_v17 = vor.u32 1.1754944e-38, %v776_v8  ;;  %vm775_vm8 = vcmp.eq.f32.partialorder %v774_v15, 8.507059e+37 }
0x1094   :  { %v1412_v10 = vpop.eup %1411 }
0x1095   :  { %v766_v11 = vmul.f32 %v1412_v10, %v764_v7  ;;  %vm771_vm0 = vweird.f32 %v1412_v10 }
0x1096   :  { %vm772_vm7 = vmor %vm770_vm6, %vm771_vm0 }
0x1097   :  { %v767_v12 = vsub.f32 1.0, %v766_v11 }
0x1099   :  { %v768_v13 = vmul.f32 %v1412_v10, %v767_v12 }
0x109b   :  { %v769_v14 = vadd.f32 %v1412_v10, %v768_v13 }
0x109d   :  { %v773_v16 = vsel %vm772_vm7, %v1412_v10, %v769_v14 }
0x109e   :  { %v778_v19 = vsel %vm775_vm8, %v777_v17, %v773_v16 }
0x109f   :  { %v781_v21 = vmul.f32 %v778_v19, %v728_v6 }
0x10e4   :  { %v784_v18 = vpop.permute.xlu2 %783 }
0x10e5   :  { %v786_v20 = vmul.f32 %v784_v18, %v778_v19 }
0x10e7   :  { %788 = vrot.lane.b32.xlu0 %v786_v20, %s1474_s24 }
0x1159   :  { %v789_v22 = vpop.permute.xlu0 %788 }
0x115a   :  { %v791_v23 = vadd.f32 %v789_v22, %v781_v21  ;;  %v665_v22 = vpop.f32.mrf.mxu3 }
0x115c   :  { %1413 = vtanh.f32 %v791_v23 }
0x1162   :  { %v1414_v24 = vpop.eup %1413 }
0x1163   :  { %794 = vrot.lane.b32.xlu1 %v1414_v24, %s1473_s23 }
0x11d5   :  { %v795_v25 = vpop.permute.xlu1 %794 }
0x11d6   :  { %v1767_v26 = vmul.f32 %v795_v25, %v778_v19 }
0x11d8   :  { %799 = vrot.lane.b32.xlu2 %v1767_v26, %s1474_s24 }
0x1232   :  { %v800_v27 = vpop.permute.xlu2 %799 }
0x1233   :  { %1314 = vmatmul.msk.f32.vlgmr.msra.gmra.mxu1 %vm116_vm5, %v800_v27 }
0x1234   :  { %1067 = vmatpush.msra.mxu1 %v1688_v57 }
0x1236   :  { %1068 = vmatpush.msra.mxu1 %v1693_v58 }
0x1238   :  { %1069 = vmatpush.msra.mxu1 %v1700_v59 }
0x123a   :  { %1070 = vmatpush.msra.mxu1 %v1707_v60 }
0x12b0   :  { %v820_v30 = vpop.f32.mrf.mxu1 }
0x12b1   :  { %v823_v31 = vadd.f32 %v820_v30, %v660_v29 }
0x12b3   :  { %1415 = vtanh.f32 %v823_v31  ;;  %v1315_v33 = vmul.f32 -1.442695, %v823_v31 }
0x12b5   :  { %1417 = vpow2.f32 %v1315_v33 }
0x12b9   :  { %v1416_v32 = vpop.eup %1415 }
0x12ba   :  { %846 = vrot.lane.b32.xlu0 %v1416_v32, %s1473_s23 }
0x12bb   :  { %v1418_v35 = vpop.eup %1417 }
0x12bc   :  { %v827_v37 = vadd.f32 1.0, %v1418_v35 }
0x12be   :  { %1419 = vrcp.f32 %v827_v37  ;;  %v839_v42 = vand.u32 2147483648, %v827_v37  ;;  %vm833_vm10 = vweird.f32 %v827_v37  ;;  %v837_v2 = vand.u32 2147483647, %v827_v37 }
0x12c0   :  { %v840_v34 = vor.u32 1.1754944e-38, %v839_v42  ;;  %vm838_vm12 = vcmp.eq.f32.partialorder %v837_v2, 8.507059e+37 }
0x12c4   :  { %v1420_v38 = vpop.eup %1419 }
0x12c5   :  { %v829_v39 = vmul.f32 %v1420_v38, %v827_v37  ;;  %vm834_vm9 = vweird.f32 %v1420_v38 }
0x12c6   :  { %vm835_vm11 = vmor %vm833_vm10, %vm834_vm9 }
0x12c7   :  { %v830_v40 = vsub.f32 1.0, %v829_v39 }
0x12c9   :  { %v831_v41 = vmul.f32 %v1420_v38, %v830_v40 }
0x12cb   :  { %v832_v36 = vadd.f32 %v1420_v38, %v831_v41 }
0x12cd   :  { %v836_v43 = vsel %vm835_vm11, %v1420_v38, %v832_v36 }
0x12ce   :  { %v841_v44 = vsel %vm838_vm12, %v840_v34, %v836_v43 }
0x12cf   :  { %v844_v45 = vmul.f32 %v841_v44, %v791_v23  ;;  %v666_v23 = vadd.f32 %v1728_v9, %v665_v22 }
0x132c   :  { %v847_v0 = vpop.permute.xlu0 %846 }
0x132d   :  { %v849_v4 = vmul.f32 %v847_v0, %v841_v44 }
0x132f   :  { %851 = vrot.lane.b32.xlu1 %v849_v4, %s1474_s24 }
0x13a1   :  { %v852_v6 = vpop.permute.xlu1 %851 }
0x13a2   :  { %v854_v46 = vadd.f32 %v852_v6, %v844_v45 }
0x13a4   :  { %1421 = vtanh.f32 %v854_v46 }
0x13aa   :  { %v1422_v47 = vpop.eup %1421 }
0x13ab   :  { %857 = vrot.lane.b32.xlu2 %v1422_v47, %s1473_s23 }
0x1405   :  { %v858_v48 = vpop.permute.xlu2 %857 }
0x1406   :  { %v1780_v49 = vmul.f32 %v858_v48, %v841_v44 }
0x1408   :  { %862 = vrot.lane.b32.xlu0 %v1780_v49, %s1474_s24 }
0x147a   :  { %v863_v50 = vpop.permute.xlu0 %862 }
0x147b   :  { %1316 = vmatmul.msk.f32.vlgmr.msra.gmra.mxu2 %vm116_vm5, %v863_v50 }
0x147c   :  { %1130 = vmatpush.msra.mxu2 %v1688_v57 }
0x147e   :  { %1131 = vmatpush.msra.mxu2 %v1693_v58 }
0x1480   :  { %1132 = vmatpush.msra.mxu2 %v1700_v59 }
0x1482   :  { %1133 = vmatpush.msra.mxu2 %v1707_v60 }
0x14fe   :  { %v883_v55 = vpop.f32.mrf.mxu2 }
0x14ff   :  { %v886_v56 = vadd.f32 %v883_v55, %v663_v52 }
0x1501   :  { %1423 = vtanh.f32 %v886_v56  ;;  %v1317_v62 = vmul.f32 -1.442695, %v886_v56 }
0x1503   :  { %1425 = vpow2.f32 %v1317_v62 }
0x1507   :  { %v1424_v61 = vpop.eup %1423 }
0x1508   :  { %909 = vrot.lane.b32.xlu1 %v1424_v61, %s1473_s23 }
0x1509   :  { %v1426_v63 = vpop.eup %1425 }
0x150a   :  { %v890_v3 = vadd.f32 1.0, %v1426_v63 }
0x150c   :  { %1427 = vrcp.f32 %v890_v3  ;;  %v902_v60 = vand.u32 2147483648, %v890_v3  ;;  %vm896_vm14 = vweird.f32 %v890_v3  ;;  %v900_v10 = vand.u32 2147483647, %v890_v3 }
0x150e   :  { %v903_v12 = vor.u32 1.1754944e-38, %v902_v60  ;;  %vm901_vm1 = vcmp.eq.f32.partialorder %v900_v10, 8.507059e+37 }
0x1512   :  { %v1428_v57 = vpop.eup %1427 }
0x1513   :  { %v892_v58 = vmul.f32 %v1428_v57, %v890_v3  ;;  %vm897_vm13 = vweird.f32 %v1428_v57 }
0x1514   :  { %vm898_vm15 = vmor %vm896_vm14, %vm897_vm13 }
0x1515   :  { %v893_v5 = vsub.f32 1.0, %v892_v58 }
0x1517   :  { %v894_v59 = vmul.f32 %v1428_v57, %v893_v5 }
0x1519   :  { %v895_v7 = vadd.f32 %v1428_v57, %v894_v59 }
0x151b   :  { %v899_v11 = vsel %vm898_vm15, %v1428_v57, %v895_v7  ;;  %v113_v57 = vpop.f32.mrf.mxu0  ;;  %v1471_v7 = vld [vmem:[%s1960_s3] ss:$0 sm:$0xff] }
0x151c   :  { %v904_v14 = vsel %vm901_vm1, %v903_v12, %v899_v11  ;;  %v114_v60 = vadd.f32 %v1471_v7, %v113_v57 }
0x151d   :  { %v907_v15 = vmul.f32 %v904_v14, %v854_v46  ;;  %v668_v46 = vpop.f32.mrf.mxu3 }
0x151e   :  { %v669_v47 = vadd.f32 %v1728_v9, %v668_v46  ;;  %v581_v12 = vadd.f32 %v1761_v54, %v114_v60 }
0x157a   :  { %v910_v13 = vpop.permute.xlu1 %909 }
0x157b   :  { %v912_v8 = vmul.f32 %v910_v13, %v904_v14 }
0x157d   :  { %914 = vrot.lane.b32.xlu2 %v912_v8, %s1474_s24 }
0x15d7   :  { %v915_v16 = vpop.permute.xlu2 %914 }
0x15d8   :  { %v917_v17 = vadd.f32 %v915_v16, %v907_v15 }
0x15da   :  { %1429 = vtanh.f32 %v917_v17 }
0x15e0   :  { %v1430_v18 = vpop.eup %1429 }
0x15e1   :  { %920 = vrot.lane.b32.xlu0 %v1430_v18, %s1473_s23 }
0x1653   :  { %v921_v19 = vpop.permute.xlu0 %920 }
0x1654   :  { %v1793_v20 = vmul.f32 %v921_v19, %v904_v14 }
0x1656   :  { %925 = vrot.lane.b32.xlu1 %v1793_v20, %s1474_s24 }
0x16c8   :  { %v926_v21 = vpop.permute.xlu1 %925 }
0x16c9   :  { %1318 = vmatmul.msk.f32.vlgmr.msrb.gmra.mxu1 %vm116_vm5, %v926_v21  ;;  %v1302_v21 = vmul.f32 -1.442695, %v581_v12 }
0x1746   :  { %v946_v24 = vpop.f32.mrf.mxu1 }
0x1747   :  { %v949_v25 = vadd.f32 %v946_v24, %v666_v23 }
0x1749   :  { %1431 = vtanh.f32 %v949_v25  ;;  %v1319_v28 = vmul.f32 -1.442695, %v949_v25 }
0x174b   :  { %1433 = vpow2.f32 %v1319_v28 }
0x174f   :  { %v1432_v27 = vpop.eup %1431 }
0x1750   :  { %972 = vrot.lane.b32.xlu2 %v1432_v27, %s1473_s23 }
0x1751   :  { %v1434_v29 = vpop.eup %1433 }
0x1752   :  { %v953_v30 = vadd.f32 1.0, %v1434_v29 }
0x1754   :  { %1435 = vrcp.f32 %v953_v30  ;;  %v965_v38 = vand.u32 2147483648, %v953_v30  ;;  %vm959_vm3 = vweird.f32 %v953_v30  ;;  %v963_v39 = vand.u32 2147483647, %v953_v30 }
0x1756   :  { %v966_v41 = vor.u32 1.1754944e-38, %v965_v38  ;;  %vm964_vm0 = vcmp.eq.f32.partialorder %v963_v39, 8.507059e+37 }
0x175a   :  { %v1436_v31 = vpop.eup %1435 }
0x175b   :  { %v955_v32 = vmul.f32 %v1436_v31, %v953_v30  ;;  %vm960_vm2 = vweird.f32 %v1436_v31 }
0x175c   :  { %vm961_vm4 = vmor %vm959_vm3, %vm960_vm2 }
0x175d   :  { %v956_v33 = vsub.f32 1.0, %v955_v32 }
0x175f   :  { %v957_v35 = vmul.f32 %v1436_v31, %v956_v33 }
0x1761   :  { %v958_v37 = vadd.f32 %v1436_v31, %v957_v35 }
0x1763   :  { %v962_v40 = vsel %vm961_vm4, %v1436_v31, %v958_v37 }
0x1764   :  { %v967_v42 = vsel %vm964_vm0, %v966_v41, %v962_v40  ;;  %v671_v41 = vpop.f32.mrf.mxu3 }
0x1765   :  { %v970_v43 = vmul.f32 %v967_v42, %v917_v17 }
0x17aa   :  { %v973_v36 = vpop.permute.xlu2 %972 }
0x17ab   :  { %v975_v2 = vmul.f32 %v973_v36, %v967_v42  ;;  %v672_v36 = vadd.f32 %v1728_v9, %v671_v41 }
0x17ad   :  { %977 = vrot.lane.b32.xlu0 %v975_v2, %s1474_s24 }
0x181f   :  { %v978_v34 = vpop.permute.xlu0 %977 }
0x1820   :  { %v980_v0 = vadd.f32 %v978_v34, %v970_v43 }
0x1822   :  { %1437 = vtanh.f32 %v980_v0 }
0x1828   :  { %v1438_v44 = vpop.eup %1437 }
0x1829   :  { %983 = vrot.lane.b32.xlu1 %v1438_v44, %s1473_s23 }
0x189b   :  { %v984_v4 = vpop.permute.xlu1 %983 }
0x189c   :  { %v986_v45 = vmul.f32 %v984_v4, %v967_v42 }
0x189e   :  { %988 = vrot.lane.b32.xlu2 %v986_v45, %s1474_s24 }
0x18f8   :  { %v1803_v6 = vpop.permute.xlu2 %988 }
0x18f9   :  { %1320 = vmatmul.msk.f32.vlgmr.msrb.gmra.mxu2 %vm116_vm5, %v1803_v6 }
0x197c   :  { %v1009_v48 = vpop.f32.mrf.mxu2 }
0x197d   :  { %v1012_v50 = vadd.f32 %v1009_v48, %v669_v47 }
0x197f   :  { %1439 = vtanh.f32 %v1012_v50  ;;  %v1321_v52 = vmul.f32 -1.442695, %v1012_v50 }
0x1981   :  { %1441 = vpow2.f32 %v1321_v52 }
0x1985   :  { %v1440_v51 = vpop.eup %1439 }
0x1986   :  { %1035 = vrot.lane.b32.xlu0 %v1440_v51, %s1473_s23 }
0x1987   :  { %v1442_v55 = vpop.eup %1441 }
0x1988   :  { %v1016_v56 = vadd.f32 1.0, %v1442_v55 }
0x198a   :  { %1443 = vrcp.f32 %v1016_v56  ;;  %v1028_v5 = vand.u32 2147483648, %v1016_v56  ;;  %vm1022_vm7 = vweird.f32 %v1016_v56  ;;  %v1026_v59 = vand.u32 2147483647, %v1016_v56 }
0x198b   :  { %1445 = vtanh.f32 %v581_v12 }
0x198c   :  { %v1029_v11 = vor.u32 1.1754944e-38, %v1028_v5  ;;  %vm1027_vm9 = vcmp.eq.f32.partialorder %v1026_v59, 8.507059e+37 }
0x1990   :  { %v1444_v61 = vpop.eup %1443 }
0x1991   :  { %v1018_v62 = vmul.f32 %v1444_v61, %v1016_v56  ;;  %vm1023_vm6 = vweird.f32 %v1444_v61  ;;  %v1446_v15 = vpop.eup %1445 }
0x1992   :  { %vm1024_vm8 = vmor %vm1022_vm7, %vm1023_vm6  ;;  %vm1191_vm7 = vcmask 523264  }
0x1993   :  { %v1019_v63 = vsub.f32 1.0, %v1018_v62 }
0x1995   :  { %v1020_v3 = vmul.f32 %v1444_v61, %v1019_v63 }
0x1997   :  { %v1021_v58 = vadd.f32 %v1444_v61, %v1020_v3 }
0x1999   :  { %v1025_v10 = vsel %vm1024_vm8, %v1444_v61, %v1021_v58  ;;  %vm1193_vm8 = vcmask 785408  }
0x199a   :  { %v1030_v14 = vsel %vm1027_vm9, %v1029_v11, %v1025_v10 }
0x199b   :  { %v1033_v16 = vmul.f32 %v1030_v14, %v980_v0 }
0x19f8   :  { %v1036_v13 = vpop.permute.xlu0 %1035 }
0x19f9   :  { %v1038_v8 = vmul.f32 %v1036_v13, %v1030_v14 }
0x19fb   :  { %1040 = vrot.lane.b32.xlu1 %v1038_v8, %s1474_s24 }
0x1a03   :  { %604 = vrot.lane.b32.xlu1 %v1446_v15, %s1473_s23  ;;  %v1213_v15 = vld [vmem:[%s1964_s7 + $0x78] sm:$0xff] }
0x1a04   :  { %1234 = vmatpush.msrb.mxu0 %v1213_v15  ;;  %v1217_v15 = vld [vmem:[%s1964_s7 + $0x98] sm:$0xff] }
0x1a6d   :  { %v1041_v17 = vpop.permute.xlu1 %1040 }
0x1a6e   :  { %v1815_v18 = vadd.f32 %v1041_v17, %v1033_v16  ;;  %v1212_v16 = vld [vmem:[%s1964_s7 + $0x70] sm:$0xff]  ;;  %v1211_v17 = vld [vmem:[%s1964_s7 + $0x68] sm:$0xff] }
0x1a6f   :  { %1235 = vmatpush.msrb.mxu0 %v1212_v16  ;;  %v1216_v16 = vld [vmem:[%s1964_s7 + $0x90] sm:$0xff] }
0x1a70   :  { %1447 = vtanh.f32 %v1815_v18 }
0x1a71   :  { %1449 = vpow2.f32 %v1302_v21  ;;  %1236 = vmatpush.msrb.mxu0 %v1211_v17  ;;  %v1215_v17 = vld [vmem:[%s1964_s7 + $0x88] sm:$0xff] }
0x1a75   :  { %v605_v37 = vpop.permute.xlu1 %604 }
0x1a76   :  { %v1448_v19 = vpop.eup %1447 }
0x1a77   :  { %1046 = vrot.lane.b32.xlu2 %v1448_v19, %s1473_s23  ;;  %v1450_v54 = vpop.eup %1449  ;;  %v1208_v19 = vld [vmem:[%s1964_s7 + $0x50] sm:$0xff] }
0x1a78   :  { %v585_v22 = vadd.f32 1.0, %v1450_v54  ;;  %v1207_v54 = vld [vmem:[%s1964_s7 + $0x48] sm:$0xff] }
0x1a7a   :  { %1451 = vrcp.f32 %v585_v22  ;;  %v597_v31 = vand.u32 2147483648, %v585_v22  ;;  %vm591_vm11 = vweird.f32 %v585_v22  ;;  %v595_v32 = vand.u32 2147483647, %v585_v22 }
0x1a7c   :  { %v598_v35 = vor.u32 1.1754944e-38, %v597_v31  ;;  %vm596_vm13 = vcmp.eq.f32.partialorder %v595_v32, 8.507059e+37 }
0x1a80   :  { %v1452_v23 = vpop.eup %1451 }
0x1a81   :  { %v587_v24 = vmul.f32 %v1452_v23, %v585_v22  ;;  %vm592_vm10 = vweird.f32 %v1452_v23  ;;  %v1206_v22 = vld [vmem:[%s1964_s7 + $0x40] sm:$0xff] }
0x1a82   :  { %vm593_vm12 = vmor %vm591_vm11, %vm592_vm10 }
0x1a83   :  { %v588_v25 = vsub.f32 1.0, %v587_v24 }
0x1a85   :  { %v589_v27 = vmul.f32 %v1452_v23, %v588_v25  ;;  %v1205_v25 = vld [vmem:[%s1964_s7 + $0x38] sm:$0xff] }
0x1a87   :  { %v590_v29 = vadd.f32 %v1452_v23, %v589_v27 }
0x1a89   :  { %v594_v33 = vsel %vm593_vm12, %v1452_v23, %v590_v29 }
0x1a8a   :  { %v599_v38 = vsel %vm596_vm13, %v598_v35, %v594_v33  ;;  %v1203_v33 = vld [vmem:[%s1964_s7 + $0x28] sm:$0xff]  ;;  %v1202_v35 = vld [vmem:[%s1964_s7 + $0x20] sm:$0xff] }
0x1a8b   :  { %v607_v39 = vmul.f32 %v605_v37, %v599_v38  ;;  %v602_v34 = vmul.f32 %v599_v38, %v1736_v1  ;;  %v1201_v37 = vld [vmem:[%s1964_s7 + $0x18] sm:$0xff] }
0x1ad1   :  { %v1047_v28 = vpop.permute.xlu2 %1046 }
0x1ad2   :  { %v1819_v30 = vmul.f32 %v1047_v28, %v1030_v14  ;;  %v1204_v28 = vld [vmem:[%s1964_s7 + $0x30] sm:$0xff] }
0x1ad4   :  { %1051 = vrot.lane.b32.xlu0 %v1819_v30, %s1474_s24  ;;  %v1330_v14 = vpack.i.bf16 %v1819_v30, %v1767_v26  ;;  %v1210_v26 = vld [vmem:[%s1964_s7 + $0x60] sm:$0xff] }
0x1ad5   :  { %1237 = vmatpush.msrb.mxu0 %v1210_v26  ;;  %v1214_v26 = vld [vmem:[%s1964_s7 + $0x80] sm:$0xff] }
0x1adc   :  { %609 = vrot.lane.b32.xlu0 %v607_v39, %s1474_s24 }
0x1b46   :  { %v1052_v40 = vpop.permute.xlu0 %1051 }
0x1b47   :  { %1322 = vmatmul.msk.f32.vlgmr.msra.gmra.mxu1 %vm116_vm5, %v1052_v40  ;;  %v1198_v40 = vld [vmem:[%s1964_s7] sm:$0xff] }
0x1b4e   :  { %v610_v43 = vpop.permute.xlu0 %609 }
0x1b4f   :  { %v612_v0 = vadd.f32 %v610_v43, %v602_v34 }
0x1bc4   :  { %v1072_v42 = vpop.f32.mrf.mxu1 }
0x1bc5   :  { %v1075_v2 = vadd.f32 %v1072_v42, %v672_v36 }
0x1bc7   :  { %1453 = vtanh.f32 %v1075_v2  ;;  %v1323_v45 = vmul.f32 -1.442695, %v1075_v2 }
0x1bc8   :  { %1455 = vtanh.f32 %v612_v0 }
0x1bc9   :  { %1457 = vpow2.f32 %v1323_v45 }
0x1bcd   :  { %v1454_v44 = vpop.eup %1453 }
0x1bce   :  { %1098 = vrot.lane.b32.xlu2 %v1454_v44, %s1473_s23  ;;  %v1456_v4 = vpop.eup %1455 }
0x1bcf   :  { %v1458_v46 = vpop.eup %1457 }
0x1bd0   :  { %v1079_v47 = vadd.f32 1.0, %v1458_v46 }
0x1bd2   :  { %1459 = vrcp.f32 %v1079_v47  ;;  %v1091_v1 = vand.u32 2147483648, %v1079_v47  ;;  %vm1085_vm15 = vweird.f32 %v1079_v47  ;;  %v1089_v56 = vand.u32 2147483647, %v1079_v47 }
0x1bd4   :  { %v1092_v62 = vor.u32 1.1754944e-38, %v1091_v1  ;;  %vm1090_vm2 = vcmp.eq.f32.partialorder %v1089_v56, 8.507059e+37 }
0x1bd6   :  { %615 = vrot.lane.b32.xlu2 %v1456_v4, %s1473_s23 }
0x1bd8   :  { %v1460_v48 = vpop.eup %1459 }
0x1bd9   :  { %v1081_v50 = vmul.f32 %v1460_v48, %v1079_v47  ;;  %vm1086_vm14 = vweird.f32 %v1460_v48 }
0x1bda   :  { %vm1087_vm1 = vmor %vm1085_vm15, %vm1086_vm14 }
0x1bdb   :  { %v1082_v51 = vsub.f32 1.0, %v1081_v50 }
0x1bdd   :  { %v1083_v52 = vmul.f32 %v1460_v48, %v1082_v51 }
0x1bdf   :  { %v1084_v55 = vadd.f32 %v1460_v48, %v1083_v52 }
0x1be1   :  { %v1088_v61 = vsel %vm1087_vm1, %v1460_v48, %v1084_v55 }
0x1be2   :  { %v1093_v3 = vsel %vm1090_vm2, %v1092_v62, %v1088_v61 }
0x1be3   :  { %v1096_v59 = vmul.f32 %v1093_v3, %v1815_v18  ;;  %v1209_v18 = vld [vmem:[%s1964_s7 + $0x58] sm:$0xff] }
0x1be4   :  { %1238 = vmatpush.msrb.mxu0 %v1209_v18 }
0x1be6   :  { %1239 = vmatpush.msrb.mxu0 %v1208_v19 }
0x1be8   :  { %1240 = vmatpush.msrb.mxu0 %v1207_v54  ;;  %v1342_v54 = vld [vmem:[%s1965_s8] ss:$0 sm:$0xff] }
0x1bea   :  { %1241 = vmatpush.msrb.mxu0 %v1206_v22 }
0x1bec   :  { %1242 = vmatpush.msrb.mxu0 %v1205_v25 }
0x1bee   :  { %1243 = vmatpush.msrb.mxu0 %v1204_v28 }
0x1bf0   :  { %1244 = vmatpush.msrb.mxu0 %v1203_v33 }
0x1bf2   :  { %1245 = vmatpush.msrb.mxu0 %v1202_v35 }
0x1bf4   :  { %1246 = vmatpush.msrb.mxu0 %v1201_v37 }
0x1c28   :  { %v1099_v63 = vpop.permute.xlu2 %1098 }
0x1c29   :  { %v1101_v57 = vmul.f32 %v1099_v63, %v1093_v3 }
0x1c2b   :  { %1103 = vrot.lane.b32.xlu1 %v1101_v57, %s1474_s24  ;;  %v1228_v57 = vld [vmem:[%s1964_s7 + $0xf0] sm:$0xff] }
0x1c30   :  { %v616_v58 = vpop.permute.xlu2 %615 }
0x1c31   :  { %v618_v5 = vmul.f32 %v616_v58, %v599_v38  ;;  %v1199_v38 = vld [vmem:[%s1964_s7 + $0x8] sm:$0xff]  ;;  %v1224_v58 = vld [vmem:[%s1964_s7 + $0xd0] sm:$0xff] }
0x1c33   :  { %632 = vrot.lane.b32.xlu1 %v618_v5, %s1474_s24 }
0x1c9d   :  { %v1104_v7 = vpop.permute.xlu1 %1103 }
0x1c9e   :  { %v1832_v60 = vadd.f32 %v1104_v7, %v1096_v59  ;;  %v1223_v7 = vld [vmem:[%s1964_s7 + $0xc8] sm:$0xff] }
0x1ca0   :  { %1461 = vtanh.f32 %v1832_v60 }
0x1ca5   :  { %v633_v10 = vpop.permute.xlu1 %632 }
0x1ca6   :  { %v1462_v11 = vpop.eup %1461  ;;  %1310 = vmatmul.msk.f32.gmra.mxu3 %vm116_vm5, %v633_v10 }
0x1ca7   :  { %1109 = vrot.lane.b32.xlu0 %v1462_v11, %s1473_s23  ;;  %v1222_v11 = vld [vmem:[%s1964_s7 + $0xc0] sm:$0xff] }
0x1d19   :  { %v1110_v12 = vpop.permute.xlu0 %1109 }
0x1d1a   :  { %v1112_v13 = vmul.f32 %v1110_v12, %v1093_v3  ;;  %v1229_v3 = vld [vmem:[%s1964_s7 + $0xf8] sm:$0xff] }
0x1d1b   :  { %1254 = vmatpush.msrb.mxu1 %v1229_v3  ;;  %v1221_v12 = vld [vmem:[%s1964_s7 + $0xb8] sm:$0xff] }
0x1d1c   :  { %1114 = vrot.lane.b32.xlu2 %v1112_v13, %s1474_s24 }
0x1d1d   :  { %1255 = vmatpush.msrb.mxu1 %v1228_v57 }
0x1d24   :  { %1331 = vrot.lane.b32.xlu2 %v1330_v14, %s1473_s23 }
0x1d29   :  { %v674_v21 = vpop.f32.mrf.mxu3 }
0x1d2a   :  { %v675_v23 = vadd.f32 %v1728_v9, %v674_v21  ;;  %v1335_v9 = vpack.i.bf16 %v1112_v13, %v1780_v49  ;;  %v1200_v49 = vld [vmem:[%s1964_s7 + $0x10] sm:$0xff]  ;;  %v1219_v13 = vld [vmem:[%s1964_s7 + $0xa8] sm:$0xff] }
0x1d2b   :  { %1247 = vmatpush.msrb.mxu0 %v1200_v49 }
0x1d2d   :  { %1248 = vmatpush.msrb.mxu0 %v1199_v38 }
0x1d2f   :  { %1249 = vmatpush.msrb.mxu0 %v1198_v40 }
0x1d76   :  { %v1115_v8 = vpop.permute.xlu2 %1114 }
0x1d77   :  { %1324 = vmatmul.msk.f32.vlgmr.msra.gmra.mxu2 %vm116_vm5, %v1115_v8  ;;  %v1218_v8 = vld [vmem:[%s1964_s7 + $0xa0] sm:$0xff] }
0x1d7e   :  { %v1332_v47 = vpop.permute.xlu2 %1331 }
0x1d7f   :  { %v1334_v48 = vunpack.i.h.bf16 %v1332_v47  ;;  %v1333_v50 = vunpack.i.l.bf16 %v1332_v47 }
0x1d81   :  { %v1195_v1 = vsel %vm116_vm5, %v1803_v6, %v1334_v48  ;;  %v1190_v56 = vsel %vm116_vm5, %v1752_v53, %v1333_v50  ;;  %v1227_v6 = vld [vmem:[%s1964_s7 + $0xe8] sm:$0xff]  ;;  %v1226_v53 = vld [vmem:[%s1964_s7 + $0xe0] sm:$0xff]  ;;  %vm1274_vm5 = vcmask 31744  }
0x1d82   :  { %1256 = vmatpush.msrb.mxu1 %v1227_v6 }
0x1d84   :  { %1257 = vmatpush.msrb.mxu1 %v1226_v53 }
0x1dfa   :  { %v1135_v24 = vpop.f32.mrf.mxu2 }
0x1dfb   :  { %v1138_v27 = vadd.f32 %v1135_v24, %v675_v23 }
0x1dfd   :  { %1463 = vtanh.f32 %v1138_v27  ;;  %v1325_v30 = vmul.f32 -1.442695, %v1138_v27 }
0x1dff   :  { %1465 = vpow2.f32 %v1325_v30 }
0x1e03   :  { %v1464_v29 = vpop.eup %1463 }
0x1e04   :  { %1161 = vrot.lane.b32.xlu0 %v1464_v29, %s1473_s23 }
0x1e05   :  { %v1466_v31 = vpop.eup %1465 }
0x1e06   :  { %v1142_v32 = vadd.f32 1.0, %v1466_v31 }
0x1e08   :  { %1467 = vrcp.f32 %v1142_v32  ;;  %v1154_v43 = vand.u32 2147483648, %v1142_v32  ;;  %vm1148_vm4 = vweird.f32 %v1142_v32  ;;  %v1152_v34 = vand.u32 2147483647, %v1142_v32 }
0x1e0a   :  { %v1155_v44 = vor.u32 1.1754944e-38, %v1154_v43  ;;  %vm1153_vm6 = vcmp.eq.f32.partialorder %v1152_v34, 8.507059e+37 }
0x1e0c   :  { %1336 = vrot.lane.b32.xlu0 %v1335_v9, %s1475_s5 }
0x1e0e   :  { %v1468_v39 = vpop.eup %1467 }
0x1e0f   :  { %v1144_v41 = vmul.f32 %v1468_v39, %v1142_v32  ;;  %vm1149_vm3 = vweird.f32 %v1468_v39 }
0x1e10   :  { %vm1150_vm0 = vmor %vm1148_vm4, %vm1149_vm3 }
0x1e11   :  { %v1145_v36 = vsub.f32 1.0, %v1144_v41 }
0x1e13   :  { %v1146_v42 = vmul.f32 %v1468_v39, %v1145_v36 }
0x1e15   :  { %v1147_v2 = vadd.f32 %v1468_v39, %v1146_v42 }
0x1e17   :  { %v1151_v0 = vsel %vm1150_vm0, %v1468_v39, %v1147_v2 }
0x1e18   :  { %v1156_v45 = vsel %vm1153_vm6, %v1155_v44, %v1151_v0 }
0x1e19   :  { %v1159_v5 = vmul.f32 %v1156_v45, %v1832_v60  ;;  %v1220_v60 = vld [vmem:[%s1964_s7 + $0xb0] sm:$0xff] }
0x1e76   :  { %v1162_v4 = vpop.permute.xlu0 %1161 }
0x1e77   :  { %v1164_v46 = vmul.f32 %v1162_v4, %v1156_v45 }
0x1e79   :  { %1166 = vrot.lane.b32.xlu1 %v1164_v46, %s1474_s24 }
0x1e7e   :  { %v1337_v51 = vpop.permute.xlu0 %1336 }
0x1e7f   :  { %v1339_v52 = vunpack.i.h.bf16 %v1337_v51  ;;  %v1338_v55 = vunpack.i.l.bf16 %v1337_v51 }
0x1e81   :  { %v1196_v61 = vsel %vm1191_vm7, %v1195_v1, %v1339_v52  ;;  %v1192_v62 = vsel %vm1191_vm7, %v1190_v56, %v1338_v55 }
0x1e82   :  { %v1194_v63 = vsel %vm1193_vm8, %v1192_v62, %v1793_v20  ;;  %v1225_v20 = vld [vmem:[%s1964_s7 + $0xd8] sm:$0xff] }
0x1e83   :  { %1250 = vmatmul.f32.vlgmr.msrb.gmra.mxu0 %v1194_v63  ;;  %1258 = vmatpush.msrb.mxu1 %v1225_v20 }
0x1e85   :  { %1259 = vmatpush.msrb.mxu1 %v1224_v58 }
0x1e87   :  { %1260 = vmatpush.msrb.mxu1 %v1223_v7 }
0x1e89   :  { %1261 = vmatpush.msrb.mxu1 %v1222_v11 }
0x1e8b   :  { %1262 = vmatpush.msrb.mxu1 %v1221_v12 }
0x1e8d   :  { %1263 = vmatpush.msrb.mxu1 %v1220_v60 }
0x1e8f   :  { %1264 = vmatpush.msrb.mxu1 %v1219_v13 }
0x1e91   :  { %1265 = vmatpush.msrb.mxu1 %v1218_v8 }
0x1e93   :  { %1266 = vmatpush.msrb.mxu1 %v1217_v15 }
0x1e95   :  { %1267 = vmatpush.msrb.mxu1 %v1216_v16 }
0x1e97   :  { %1268 = vmatpush.msrb.mxu1 %v1215_v17 }
0x1e99   :  { %1269 = vmatpush.msrb.mxu1 %v1214_v26 }
0x1eeb   :  { %v1167_v59 = vpop.permute.xlu1 %1166 }
0x1eec   :  { %v1169_v10 = vadd.f32 %v1167_v59, %v1159_v5 }
0x1eee   :  { %1469 = vtanh.f32 %v1169_v10 }
0x1ef4   :  { %v1470_v14 = vpop.eup %1469 }
0x1ef5   :  { %1172 = vrot.lane.b32.xlu1 %v1470_v14, %s1473_s23 }
0x1f00   :  { %v1251_v22 = vpop.f32.mrf.mxu0 }
0x1f01   :  { %v1252_v23 = vadd.f32 %v1342_v54, %v1251_v22 }
0x1f67   :  { %v1173_v18 = vpop.permute.xlu1 %1172 }
0x1f68   :  { %v1175_v19 = vmul.f32 %v1173_v18, %v1156_v45 }
0x1f6a   :  { %v1197_v21 = vsel %vm1193_vm8, %v1196_v61, %v1175_v19 }
0x1f6b   :  { %1270 = vmatmul.f32.vlgmr.msrb.gmra.mxu1 %v1197_v21 }
0x1fe8   :  { %v1271_v24 = vpop.f32.mrf.mxu1 }
0x1fe9   :  { %v1272_v25 = vadd.f32 %v1271_v24, %v1252_v23 }
0x1feb   :  { %1275 = vst.msk [vmem:[%s1966_s9] sm:$0xff] %vm1274_vm5, %v1272_v25 }

</bundles_post_ra>
